<compile_context>
chip_gen: v7x
topology: tpu7x:2x2x1
jax: 0.10.0
libtpu: 0.0.40
codegen_flags: <defaults>
</compile_context>

<pallas_src>
import numpy as np

import jax
import jax.numpy as jnp
from jax.experimental import pallas as pl
from jax.experimental.pallas import tpu as pltpu

_BN_EPS = 1e-5

# LeNet-5 geometry (fixed by the module: 32x32x1 input, 5x5 convs, 2x2 pools)
_H0, _K = 32, 5
_H1, _C1 = 28, 6            # conv1 output: 28x28x6
_P1 = 14                    # pool1 output: 14x14x6
_H2, _C2 = 10, 16           # conv2 output: 10x10x16
_P2 = 5                     # pool2 output: 5x5x16
_L1, _L2 = _H1 * _C1, _H2 * _C2       # lane widths 168, 160
_LP1, _LP2 = _P1 * _C1, _P2 * _C2     # 84, 80
_F1, _F2 = 120, 84
_LANE = 128                 # padded FC / output lane width


# ------------------- host-side constant "structure" matrices -------------------

def _conv_indicator(w_in, w_out, k):
    # ind[win, w, dj] = 1 iff win == w + dj   (valid-conv column alignment)
    ind = np.zeros((w_in, w_out, k), np.float32)
    for w in range(w_out):
        for dj in range(k):
            ind[w + dj, w, dj] = 1.0
    return ind


def _pool_cols(w_in, c):
    # (w_in*c, (w_in//2)*c): channel-preserving column-pair average
    # (lanes are interleaved as w*c + ch).
    wp = np.zeros((w_in * c, (w_in // 2) * c), np.float32)
    for v in range(w_in // 2):
        for dw in range(2):
            for ch in range(c):
                wp[(2 * v + dw) * c + ch, v * c + ch] = 0.5
    return wp


def _chan_sum(w, c):
    # (w*c, c): right-multiply sums the interleaved lanes per channel.
    m = np.zeros((w * c, c), np.float32)
    for wi in range(w):
        for ch in range(c):
            m[wi * c + ch, ch] = 1.0
    return m


_IND1 = _conv_indicator(_H0, _H1, _K)      # (32, 28, 5)
_IND2 = _conv_indicator(_P1, _H2, _K)      # (14, 10, 5)
_WP1 = _pool_cols(_H1, _C1)                # (168, 84)
_WP2 = _pool_cols(_H2, _C2)                # (160, 80)
_M1 = _chan_sum(_H1, _C1)                  # (168, 6)
_M2 = _chan_sum(_H2, _C2)                  # (160, 16)

# Packed per-channel projection matrices P[l, l'] = 1 iff same channel:
# dot(per-lane sums, P) spreads the per-channel total back onto every lane.
_PP_NP = np.zeros((_L1 + _L2, _L1), np.float32)
_PP_NP[:_L1, :_L1] = _M1 @ _M1.T           # (168, 168)
_PP_NP[_L1:, :_L2] = _M2 @ _M2.T           # (160, 160)
_PP = jnp.asarray(_PP_NP)


def _shift_pool_rows(batch):
    # a1[di, b*10+i, b*28 + 2*(i+di) + t] = 0.5 :
    # pool1 row-pair average fused with the conv2 row shift (block-diag over batch).
    a1 = np.zeros((_K, batch * _H2, batch * _H1), np.float32)
    for di in range(_K):
        for b in range(batch):
            for i in range(_H2):
                for t in range(2):
                    a1[di, b * _H2 + i, b * _H1 + 2 * (i + di) + t] = 0.5
    return a1


def _pool_gather_rows(batch):
    # a2[u, b, b*10 + 2u + t] = 0.5 :
    # pool2 row-pair average fused with the per-sample row gather feeding fc1.
    a2 = np.zeros((_P2, batch, batch * _H2), np.float32)
    for u in range(_P2):
        for b in range(batch):
            for t in range(2):
                a2[u, b, b * _H2 + 2 * u + t] = 0.5
    return a2


# ------------------------------- fused kernel -------------------------------

def _lenet5_kernel(xs_ref, t1_ref, a1_ref, t2_ref, a2_ref, gfc_ref,
                   pp_ref, sm_ref, wfc_ref, o_ref, c1_ref, c2_ref):
    f32, bf16 = jnp.float32, jnp.bfloat16
    rows1 = c1_ref.shape[0]          # B*28
    rows2 = c2_ref.shape[0]          # B*10
    batch = o_ref.shape[0]

    # ---- conv1: five batched banded matmuls over the row shifts ----
    acc = jnp.zeros((rows1, _L1), f32)
    for di in range(_K):
        acc = acc + jnp.dot(xs_ref[di], t1_ref[di], preferred_element_type=f32)
    c1_ref[...] = acc

    # ---- BatchNorm1 (training-mode batch stats, biased var) + ReLU ----
    p1m = pp_ref[0:_L1, 0:_L1]
    inv_n1 = 1.0 / float(rows1 * _H1)
    c1 = c1_ref[...]
    mean1 = jnp.dot(jnp.sum(c1, axis=0, keepdims=True), p1m,
                    preferred_element_type=f32) * inv_n1          # per-lane mean
    d1 = c1 - mean1
    var1 = jnp.dot(jnp.sum(d1 * d1, axis=0, keepdims=True), p1m,
                   preferred_element_type=f32) * inv_n1
    scale1 = sm_ref[0:1, :] * jax.lax.rsqrt(var1 + _BN_EPS)        # gamma per lane
    y1 = jnp.maximum(d1 * scale1 + sm_ref[1:2, :], 0.0).astype(bf16)

    # ---- pool1 (rows via a1, cols folded into t2) + conv2, batched ----
    acc = jnp.zeros((rows2, _L2), f32)
    for di in range(_K):
        sel = jnp.dot(a1_ref[di], y1, preferred_element_type=f32).astype(bf16)
        acc = acc + jnp.dot(sel, t2_ref[di], preferred_element_type=f32)
    c2_ref[...] = acc

    # ---- BatchNorm2 + ReLU ----
    p2m = pp_ref[_L1:_L1 + _L2, 0:_L2]
    inv_n2 = 1.0 / float(rows2 * _H2)
    c2 = c2_ref[...]
    mean2 = jnp.dot(jnp.sum(c2, axis=0, keepdims=True), p2m,
                    preferred_element_type=f32) * inv_n2
    d2 = c2 - mean2
    var2 = jnp.dot(jnp.sum(d2 * d2, axis=0, keepdims=True), p2m,
                   preferred_element_type=f32) * inv_n2
    scale2 = sm_ref[2:3, 0:_L2] * jax.lax.rsqrt(var2 + _BN_EPS)
    y2 = jnp.maximum(d2 * scale2 + sm_ref[3:4, 0:_L2], 0.0).astype(bf16)

    # ---- pool2 + NCHW flatten + fc1 (fused), then fc2 / fc3 / softmax ----
    h1 = jnp.zeros((batch, _LANE), f32)
    for u in range(_P2):
        sel = jnp.dot(a2_ref[u], y2, preferred_element_type=f32).astype(bf16)
        h1 = h1 + jnp.dot(sel, gfc_ref[u], preferred_element_type=f32)
    h1 = jnp.maximum(h1 + sm_ref[4:5, 0:_LANE], 0.0).astype(bf16)

    w2 = wfc_ref[0:_LANE, :]                 # (128, 128) padded fc2 weight
    w3 = wfc_ref[_LANE:2 * _LANE, :]         # (128, 128) padded fc3 weight
    h2 = jnp.maximum(jnp.dot(h1, w2, preferred_element_type=f32)
                     + sm_ref[5:6, 0:_LANE], 0.0).astype(bf16)
    logits = jnp.dot(h2, w3, preferred_element_type=f32) + sm_ref[6:7, 0:_LANE]

    # softmax over classes (padded class lanes carry -1e30 bias -> prob 0)
    m = jnp.max(logits, axis=-1, keepdims=True)
    e = jnp.exp(logits - m)
    o_ref[...] = e / jnp.sum(e, axis=-1, keepdims=True)


# ------------------------------- wrapper / glue -------------------------------

def lenet5_forward(x_nchw, params):
    b = x_nchw.shape[0]
    num_classes = params["fc3_w"].shape[0]
    assert num_classes <= _LANE
    assert x_nchw.shape[1:] == (1, _H0, _H0)
    f32, bf16 = jnp.float32, jnp.bfloat16

    x = x_nchw[:, 0, :, :].astype(f32)                           # (B, 32, 32)
    # 5 row-shifted copies so conv1 is five (B*28, 32) x (32, 168) matmuls.
    xs = jnp.stack([x[:, di:di + _H1, :].reshape(b * _H1, _H0)
                    for di in range(_K)], axis=0).astype(bf16)   # (5, B*28, 32)

    # Banded (Toeplitz-style) conv weight matrices; conv biases are dropped:
    # training-mode BatchNorm's mean subtraction cancels them exactly.
    w1 = params["conv1_w"][:, 0, :, :]                           # (6, 5, 5)
    t1 = jnp.einsum('xwd,cid->ixwc', jnp.asarray(_IND1),
                    w1).reshape(_K, _H0, _L1).astype(bf16)       # (5, 32, 168)
    t2 = jnp.einsum('xwd,ocid->ixcwo', jnp.asarray(_IND2),
                    params["conv2_w"]).reshape(_K, _LP1, _L2)    # (5, 84, 160)
    # fold pool1's column (width) averaging into the conv2 weights
    t2p = jnp.einsum('lm,imo->ilo', jnp.asarray(_WP1), t2).astype(bf16)  # (5,168,160)

    # fc1 weight with the PyTorch NCHW flatten order folded in, plus pool2's
    # column averaging, padded to 128 output lanes.
    gfc = jnp.transpose(params["fc1_w"].reshape(_F1, _C2, _P2, _P2),
                        (2, 3, 1, 0)).reshape(_P2, _LP2, _F1)    # (5, 80, 120)
    gfcp = jnp.einsum('lm,umo->ulo', jnp.asarray(_WP2), gfc)     # (5, 160, 120)
    gfcp = jnp.pad(gfcp, ((0, 0), (0, 0), (0, _LANE - _F1))).astype(bf16)

    # row-pool / row-shift / row-gather selection matrices (block-diag over B)
    a1 = jnp.asarray(_shift_pool_rows(b), bf16)                  # (5, B*10, B*28)
    a2 = jnp.asarray(_pool_gather_rows(b), bf16)                 # (5, B,   B*10)

    # packed small per-channel BN params + FC biases (one DMA, f32)
    sm = jnp.zeros((8, _L1), f32)
    sm = sm.at[0, :].set(jnp.tile(params["bn1_g"], _H1))
    sm = sm.at[1, :].set(jnp.tile(params["bn1_b"], _H1))
    sm = sm.at[2, :_L2].set(jnp.tile(params["bn2_g"], _H2))
    sm = sm.at[3, :_L2].set(jnp.tile(params["bn2_b"], _H2))
    sm = sm.at[4, :_F1].set(params["fc1_b"])
    sm = sm.at[5, :_F2].set(params["fc2_b"])
    sm = sm.at[6, :_LANE].set(jnp.full((_LANE,), -1e30, f32))    # pad classes -> prob 0
    sm = sm.at[6, :num_classes].set(params["fc3_b"])

    # packed fc2/fc3 weights, padded lane/sublane-dense to 128 (one DMA, bf16)
    wfc = jnp.zeros((2 * _LANE, _LANE), f32)
    wfc = wfc.at[:_F1, :_F2].set(params["fc2_w"].T)
    wfc = wfc.at[_LANE:_LANE + _F2, :num_classes].set(params["fc3_w"].T)
    wfc = wfc.astype(bf16)

    args = (xs, t1, a1, t2p, a2, gfcp, _PP, sm, wfc)

    out = pl.pallas_call(
        _lenet5_kernel,
        out_shape=jax.ShapeDtypeStruct((b, _LANE), jnp.float32),
        in_specs=[pl.BlockSpec(memory_space=pltpu.MemorySpace.VMEM)] * len(args),
        out_specs=pl.BlockSpec(memory_space=pltpu.MemorySpace.VMEM),
        scratch_shapes=[pltpu.VMEM((b * _H1, _L1), jnp.float32),   # conv1 out
                        pltpu.VMEM((b * _H2, _L2), jnp.float32)],  # conv2 out
    )(*args)
    return out[:, :num_classes]


def init_params(key, num_classes):
    ks = jax.random.split(key, 12)

    def nrm(k, shape, scale):
        return scale * jax.random.normal(k, shape, jnp.float32)

    return {
        "conv1_w": nrm(ks[0], (6, 1, 5, 5), 0.2),
        "conv1_b": nrm(ks[1], (6,), 0.05),   # unused in kernel (cancelled by BN)
        "bn1_g": 1.0 + nrm(ks[2], (6,), 0.1),
        "bn1_b": nrm(ks[3], (6,), 0.05),
        "conv2_w": nrm(ks[4], (16, 6, 5, 5), 0.1),
        "conv2_b": nrm(ks[5], (16,), 0.05),  # unused in kernel (cancelled by BN)
        "bn2_g": 1.0 + nrm(ks[6], (16,), 0.1),
        "bn2_b": nrm(ks[7], (16,), 0.05),
        "fc1_w": nrm(ks[8], (120, 400), 0.05),
        "fc1_b": jnp.zeros((120,), jnp.float32),
        "fc2_w": nrm(ks[9], (84, 120), 0.1),
        "fc2_b": jnp.zeros((84,), jnp.float32),
        "fc3_w": nrm(ks[10], (num_classes, 84), 0.1),
        "fc3_b": nrm(ks[11], (num_classes,), 0.05),
    }


if __name__ == "__main__":
    num_classes = 10
    key = jax.random.PRNGKey(0)
    kp, kx = jax.random.split(key)
    params = init_params(kp, num_classes)
    # LeNet-5 geometry requires 32x32 single-channel inputs (16*5*5 = 400 -> fc1).
    x = jax.random.normal(kx, (2, 1, 32, 32), jnp.float32)   # NCHW, like PyTorch

    out = jax.jit(lenet5_forward)(x, params)
    out = jax.block_until_ready(out)

    assert out.shape == (2, num_classes)
    assert bool(jnp.all(jnp.isfinite(out)))
    assert bool(jnp.allclose(jnp.sum(out, axis=-1), 1.0, atol=1e-4))
    print("KERNEL_OK")
</pallas_src>

<mosaic_0001>
module attributes {stable_mosaic.version = 11 : i64} {
  func.func @_lenet5_kernel(%arg0: memref<5x56x32xbf16, #tpu.memory_space<vmem>>, %arg1: memref<5x32x168xbf16, #tpu.memory_space<vmem>>, %arg2: memref<5x20x56xbf16, #tpu.memory_space<vmem>>, %arg3: memref<5x168x160xbf16, #tpu.memory_space<vmem>>, %arg4: memref<5x2x20xbf16, #tpu.memory_space<vmem>>, %arg5: memref<5x160x128xbf16, #tpu.memory_space<vmem>>, %arg6: memref<328x168xf32, #tpu.memory_space<vmem>>, %arg7: memref<8x168xf32, #tpu.memory_space<vmem>>, %arg8: memref<256x128xbf16, #tpu.memory_space<vmem>>, %arg9: memref<2x128xf32, #tpu.memory_space<vmem>>, %arg10: memref<56x168xf32, #tpu.memory_space<vmem>>, %arg11: memref<20x160xf32, #tpu.memory_space<vmem>>) attributes {dimension_semantics = [], scalar_prefetch = 0 : i64, scratch_operands = 2 : i64, tpu.core_type = #tpu.core_type<tc>} {
    %cst = arith.constant 0.000000e+00 : f32
    %0 = vector.broadcast %cst : f32 to vector<56x168xf32>
    %c0 = arith.constant 0 : index
    %c0_0 = arith.constant 0 : index
    %c0_1 = arith.constant 0 : index
    %1 = vector.load %arg0[%c0, %c0_0, %c0_1] : memref<5x56x32xbf16, #tpu.memory_space<vmem>>, vector<1x56x32xbf16>
    %2 = vector.shape_cast %1 : vector<1x56x32xbf16> to vector<56x32xbf16>
    %c0_2 = arith.constant 0 : index
    %c0_3 = arith.constant 0 : index
    %c0_4 = arith.constant 0 : index
    %3 = vector.load %arg1[%c0_2, %c0_3, %c0_4] : memref<5x32x168xbf16, #tpu.memory_space<vmem>>, vector<1x32x168xbf16>
    %4 = vector.shape_cast %3 : vector<1x32x168xbf16> to vector<32x168xbf16>
    %cst_5 = arith.constant dense<0.000000e+00> : vector<56x168xf32>
    %5 = tpu.matmul %2, %4, %cst_5 {dimension_numbers = #tpu.dot_dimension_numbers<[1], [0], [0], [1], [0, 0, 1, 1], [], []>} : vector<56x32xbf16>, vector<32x168xbf16>, vector<56x168xf32> -> vector<56x168xf32>
    %6 = arith.addf %0, %5 : vector<56x168xf32>
    %c1 = arith.constant 1 : index
    %c0_6 = arith.constant 0 : index
    %c0_7 = arith.constant 0 : index
    %7 = vector.load %arg0[%c1, %c0_6, %c0_7] : memref<5x56x32xbf16, #tpu.memory_space<vmem>>, vector<1x56x32xbf16>
    %8 = vector.shape_cast %7 : vector<1x56x32xbf16> to vector<56x32xbf16>
    %c1_8 = arith.constant 1 : index
    %c0_9 = arith.constant 0 : index
    %c0_10 = arith.constant 0 : index
    %9 = vector.load %arg1[%c1_8, %c0_9, %c0_10] : memref<5x32x168xbf16, #tpu.memory_space<vmem>>, vector<1x32x168xbf16>
    %10 = vector.shape_cast %9 : vector<1x32x168xbf16> to vector<32x168xbf16>
    %cst_11 = arith.constant dense<0.000000e+00> : vector<56x168xf32>
    %11 = tpu.matmul %8, %10, %cst_11 {dimension_numbers = #tpu.dot_dimension_numbers<[1], [0], [0], [1], [0, 0, 1, 1], [], []>} : vector<56x32xbf16>, vector<32x168xbf16>, vector<56x168xf32> -> vector<56x168xf32>
    %12 = arith.addf %6, %11 : vector<56x168xf32>
    %c2 = arith.constant 2 : index
    %c0_12 = arith.constant 0 : index
    %c0_13 = arith.constant 0 : index
    %13 = vector.load %arg0[%c2, %c0_12, %c0_13] : memref<5x56x32xbf16, #tpu.memory_space<vmem>>, vector<1x56x32xbf16>
    %14 = vector.shape_cast %13 : vector<1x56x32xbf16> to vector<56x32xbf16>
    %c2_14 = arith.constant 2 : index
    %c0_15 = arith.constant 0 : index
    %c0_16 = arith.constant 0 : index
    %15 = vector.load %arg1[%c2_14, %c0_15, %c0_16] : memref<5x32x168xbf16, #tpu.memory_space<vmem>>, vector<1x32x168xbf16>
    %16 = vector.shape_cast %15 : vector<1x32x168xbf16> to vector<32x168xbf16>
    %cst_17 = arith.constant dense<0.000000e+00> : vector<56x168xf32>
    %17 = tpu.matmul %14, %16, %cst_17 {dimension_numbers = #tpu.dot_dimension_numbers<[1], [0], [0], [1], [0, 0, 1, 1], [], []>} : vector<56x32xbf16>, vector<32x168xbf16>, vector<56x168xf32> -> vector<56x168xf32>
    %18 = arith.addf %12, %17 : vector<56x168xf32>
    %c3 = arith.constant 3 : index
    %c0_18 = arith.constant 0 : index
    %c0_19 = arith.constant 0 : index
    %19 = vector.load %arg0[%c3, %c0_18, %c0_19] : memref<5x56x32xbf16, #tpu.memory_space<vmem>>, vector<1x56x32xbf16>
    %20 = vector.shape_cast %19 : vector<1x56x32xbf16> to vector<56x32xbf16>
    %c3_20 = arith.constant 3 : index
    %c0_21 = arith.constant 0 : index
    %c0_22 = arith.constant 0 : index
    %21 = vector.load %arg1[%c3_20, %c0_21, %c0_22] : memref<5x32x168xbf16, #tpu.memory_space<vmem>>, vector<1x32x168xbf16>
    %22 = vector.shape_cast %21 : vector<1x32x168xbf16> to vector<32x168xbf16>
    %cst_23 = arith.constant dense<0.000000e+00> : vector<56x168xf32>
    %23 = tpu.matmul %20, %22, %cst_23 {dimension_numbers = #tpu.dot_dimension_numbers<[1], [0], [0], [1], [0, 0, 1, 1], [], []>} : vector<56x32xbf16>, vector<32x168xbf16>, vector<56x168xf32> -> vector<56x168xf32>
    %24 = arith.addf %18, %23 : vector<56x168xf32>
    %c4 = arith.constant 4 : index
    %c0_24 = arith.constant 0 : index
    %c0_25 = arith.constant 0 : index
    %25 = vector.load %arg0[%c4, %c0_24, %c0_25] : memref<5x56x32xbf16, #tpu.memory_space<vmem>>, vector<1x56x32xbf16>
    %26 = vector.shape_cast %25 : vector<1x56x32xbf16> to vector<56x32xbf16>
    %c4_26 = arith.constant 4 : index
    %c0_27 = arith.constant 0 : index
    %c0_28 = arith.constant 0 : index
    %27 = vector.load %arg1[%c4_26, %c0_27, %c0_28] : memref<5x32x168xbf16, #tpu.memory_space<vmem>>, vector<1x32x168xbf16>
    %28 = vector.shape_cast %27 : vector<1x32x168xbf16> to vector<32x168xbf16>
    %cst_29 = arith.constant dense<0.000000e+00> : vector<56x168xf32>
    %29 = tpu.matmul %26, %28, %cst_29 {dimension_numbers = #tpu.dot_dimension_numbers<[1], [0], [0], [1], [0, 0, 1, 1], [], []>} : vector<56x32xbf16>, vector<32x168xbf16>, vector<56x168xf32> -> vector<56x168xf32>
    %30 = arith.addf %24, %29 : vector<56x168xf32>
    %c0_30 = arith.constant 0 : index
    %c0_31 = arith.constant 0 : index
    %31 = vector.load %arg10[%c0_30, %c0_31] : memref<56x168xf32, #tpu.memory_space<vmem>>, vector<56x168xf32>
    tpu.vector_store %arg10[%c0_30, %c0_31], %30 {strides = array<i32>} : memref<56x168xf32, #tpu.memory_space<vmem>>, vector<56x168xf32>,
    %c0_32 = arith.constant 0 : index
    %c0_33 = arith.constant 0 : index
    %32 = vector.load %arg6[%c0_32, %c0_33] : memref<328x168xf32, #tpu.memory_space<vmem>>, vector<168x168xf32>
    %c0_34 = arith.constant 0 : index
    %c0_35 = arith.constant 0 : index
    %33 = vector.load %arg10[%c0_34, %c0_35] : memref<56x168xf32, #tpu.memory_space<vmem>>, vector<56x168xf32>
    %cst_36 = arith.constant dense<0.000000e+00> : vector<168xf32>
    %34 = vector.multi_reduction <add>, %33, %cst_36 [0] : vector<56x168xf32> to vector<168xf32>
    %35 = vector.shape_cast %34 : vector<168xf32> to vector<1x168xf32>
    %cst_37 = arith.constant dense<0.000000e+00> : vector<1x168xf32>
    %36 = tpu.matmul %35, %32, %cst_37 {dimension_numbers = #tpu.dot_dimension_numbers<[1], [0], [0], [1], [0, 0, 1, 1], [], []>} : vector<1x168xf32>, vector<168x168xf32>, vector<1x168xf32> -> vector<1x168xf32>
    %cst_38 = arith.constant 6.37755089E-4 : f32
    %37 = vector.broadcast %cst_38 : f32 to vector<1x168xf32>
    %38 = arith.mulf %36, %37 : vector<1x168xf32>
    %39 = vector.broadcast %38 : vector<1x168xf32> to vector<56x168xf32>
    %40 = arith.subf %33, %39 : vector<56x168xf32>
    %41 = arith.mulf %40, %40 : vector<56x168xf32>
    %cst_39 = arith.constant dense<0.000000e+00> : vector<168xf32>
    %42 = vector.multi_reduction <add>, %41, %cst_39 [0] : vector<56x168xf32> to vector<168xf32>
    %43 = vector.shape_cast %42 : vector<168xf32> to vector<1x168xf32>
    %cst_40 = arith.constant dense<0.000000e+00> : vector<1x168xf32>
    %44 = tpu.matmul %43, %32, %cst_40 {dimension_numbers = #tpu.dot_dimension_numbers<[1], [0], [0], [1], [0, 0, 1, 1], [], []>} : vector<1x168xf32>, vector<168x168xf32>, vector<1x168xf32> -> vector<1x168xf32>
    %cst_41 = arith.constant 6.37755089E-4 : f32
    %45 = vector.broadcast %cst_41 : f32 to vector<1x168xf32>
    %46 = arith.mulf %44, %45 : vector<1x168xf32>
    %c0_42 = arith.constant 0 : index
    %c0_43 = arith.constant 0 : index
    %47 = vector.load %arg7[%c0_42, %c0_43] : memref<8x168xf32, #tpu.memory_space<vmem>>, vector<1x168xf32>
    %cst_44 = arith.constant 9.99999974E-6 : f32
    %48 = vector.broadcast %cst_44 : f32 to vector<1x168xf32>
    %49 = arith.addf %46, %48 : vector<1x168xf32>
    %50 = math.rsqrt %49 : vector<1x168xf32>
    %51 = arith.mulf %47, %50 : vector<1x168xf32>
    %52 = vector.broadcast %51 : vector<1x168xf32> to vector<56x168xf32>
    %53 = arith.mulf %40, %52 : vector<56x168xf32>
    %c1_45 = arith.constant 1 : index
    %c0_46 = arith.constant 0 : index
    %54 = vector.load %arg7[%c1_45, %c0_46] : memref<8x168xf32, #tpu.memory_space<vmem>>, vector<1x168xf32>
    %55 = vector.broadcast %54 : vector<1x168xf32> to vector<56x168xf32>
    %56 = arith.addf %53, %55 : vector<56x168xf32>
    %cst_47 = arith.constant 0.000000e+00 : f32
    %57 = vector.broadcast %cst_47 : f32 to vector<56x168xf32>
    %58 = arith.maximumf %56, %57 : vector<56x168xf32>
    %59 = arith.truncf %58 : vector<56x168xf32> to vector<56x168xbf16>
    %cst_48 = arith.constant 0.000000e+00 : f32
    %60 = vector.broadcast %cst_48 : f32 to vector<20x160xf32>
    %c0_49 = arith.constant 0 : index
    %c0_50 = arith.constant 0 : index
    %c0_51 = arith.constant 0 : index
    %61 = vector.load %arg2[%c0_49, %c0_50, %c0_51] : memref<5x20x56xbf16, #tpu.memory_space<vmem>>, vector<1x20x56xbf16>
    %62 = vector.shape_cast %61 : vector<1x20x56xbf16> to vector<20x56xbf16>
    %cst_52 = arith.constant dense<0.000000e+00> : vector<20x168xf32>
    %63 = tpu.matmul %62, %59, %cst_52 {dimension_numbers = #tpu.dot_dimension_numbers<[1], [0], [0], [1], [0, 0, 1, 1], [], []>} : vector<20x56xbf16>, vector<56x168xbf16>, vector<20x168xf32> -> vector<20x168xf32>
    %64 = arith.truncf %63 : vector<20x168xf32> to vector<20x168xbf16>
    %c0_53 = arith.constant 0 : index
    %c0_54 = arith.constant 0 : index
    %c0_55 = arith.constant 0 : index
    %65 = vector.load %arg3[%c0_53, %c0_54, %c0_55] : memref<5x168x160xbf16, #tpu.memory_space<vmem>>, vector<1x168x160xbf16>
    %66 = vector.shape_cast %65 : vector<1x168x160xbf16> to vector<168x160xbf16>
    %cst_56 = arith.constant dense<0.000000e+00> : vector<20x160xf32>
    %67 = tpu.matmul %64, %66, %cst_56 {dimension_numbers = #tpu.dot_dimension_numbers<[1], [0], [0], [1], [0, 0, 1, 1], [], []>} : vector<20x168xbf16>, vector<168x160xbf16>, vector<20x160xf32> -> vector<20x160xf32>
    %68 = arith.addf %60, %67 : vector<20x160xf32>
    %c1_57 = arith.constant 1 : index
    %c0_58 = arith.constant 0 : index
    %c0_59 = arith.constant 0 : index
    %69 = vector.load %arg2[%c1_57, %c0_58, %c0_59] : memref<5x20x56xbf16, #tpu.memory_space<vmem>>, vector<1x20x56xbf16>
    %70 = vector.shape_cast %69 : vector<1x20x56xbf16> to vector<20x56xbf16>
    %cst_60 = arith.constant dense<0.000000e+00> : vector<20x168xf32>
    %71 = tpu.matmul %70, %59, %cst_60 {dimension_numbers = #tpu.dot_dimension_numbers<[1], [0], [0], [1], [0, 0, 1, 1], [], []>} : vector<20x56xbf16>, vector<56x168xbf16>, vector<20x168xf32> -> vector<20x168xf32>
    %72 = arith.truncf %71 : vector<20x168xf32> to vector<20x168xbf16>
    %c1_61 = arith.constant 1 : index
    %c0_62 = arith.constant 0 : index
    %c0_63 = arith.constant 0 : index
    %73 = vector.load %arg3[%c1_61, %c0_62, %c0_63] : memref<5x168x160xbf16, #tpu.memory_space<vmem>>, vector<1x168x160xbf16>
    %74 = vector.shape_cast %73 : vector<1x168x160xbf16> to vector<168x160xbf16>
    %cst_64 = arith.constant dense<0.000000e+00> : vector<20x160xf32>
    %75 = tpu.matmul %72, %74, %cst_64 {dimension_numbers = #tpu.dot_dimension_numbers<[1], [0], [0], [1], [0, 0, 1, 1], [], []>} : vector<20x168xbf16>, vector<168x160xbf16>, vector<20x160xf32> -> vector<20x160xf32>
    %76 = arith.addf %68, %75 : vector<20x160xf32>
    %c2_65 = arith.constant 2 : index
    %c0_66 = arith.constant 0 : index
    %c0_67 = arith.constant 0 : index
    %77 = vector.load %arg2[%c2_65, %c0_66, %c0_67] : memref<5x20x56xbf16, #tpu.memory_space<vmem>>, vector<1x20x56xbf16>
    %78 = vector.shape_cast %77 : vector<1x20x56xbf16> to vector<20x56xbf16>
    %cst_68 = arith.constant dense<0.000000e+00> : vector<20x168xf32>
    %79 = tpu.matmul %78, %59, %cst_68 {dimension_numbers = #tpu.dot_dimension_numbers<[1], [0], [0], [1], [0, 0, 1, 1], [], []>} : vector<20x56xbf16>, vector<56x168xbf16>, vector<20x168xf32> -> vector<20x168xf32>
    %80 = arith.truncf %79 : vector<20x168xf32> to vector<20x168xbf16>
    %c2_69 = arith.constant 2 : index
    %c0_70 = arith.constant 0 : index
    %c0_71 = arith.constant 0 : index
    %81 = vector.load %arg3[%c2_69, %c0_70, %c0_71] : memref<5x168x160xbf16, #tpu.memory_space<vmem>>, vector<1x168x160xbf16>
    %82 = vector.shape_cast %81 : vector<1x168x160xbf16> to vector<168x160xbf16>
    %cst_72 = arith.constant dense<0.000000e+00> : vector<20x160xf32>
    %83 = tpu.matmul %80, %82, %cst_72 {dimension_numbers = #tpu.dot_dimension_numbers<[1], [0], [0], [1], [0, 0, 1, 1], [], []>} : vector<20x168xbf16>, vector<168x160xbf16>, vector<20x160xf32> -> vector<20x160xf32>
    %84 = arith.addf %76, %83 : vector<20x160xf32>
    %c3_73 = arith.constant 3 : index
    %c0_74 = arith.constant 0 : index
    %c0_75 = arith.constant 0 : index
    %85 = vector.load %arg2[%c3_73, %c0_74, %c0_75] : memref<5x20x56xbf16, #tpu.memory_space<vmem>>, vector<1x20x56xbf16>
    %86 = vector.shape_cast %85 : vector<1x20x56xbf16> to vector<20x56xbf16>
    %cst_76 = arith.constant dense<0.000000e+00> : vector<20x168xf32>
    %87 = tpu.matmul %86, %59, %cst_76 {dimension_numbers = #tpu.dot_dimension_numbers<[1], [0], [0], [1], [0, 0, 1, 1], [], []>} : vector<20x56xbf16>, vector<56x168xbf16>, vector<20x168xf32> -> vector<20x168xf32>
    %88 = arith.truncf %87 : vector<20x168xf32> to vector<20x168xbf16>
    %c3_77 = arith.constant 3 : index
    %c0_78 = arith.constant 0 : index
    %c0_79 = arith.constant 0 : index
    %89 = vector.load %arg3[%c3_77, %c0_78, %c0_79] : memref<5x168x160xbf16, #tpu.memory_space<vmem>>, vector<1x168x160xbf16>
    %90 = vector.shape_cast %89 : vector<1x168x160xbf16> to vector<168x160xbf16>
    %cst_80 = arith.constant dense<0.000000e+00> : vector<20x160xf32>
    %91 = tpu.matmul %88, %90, %cst_80 {dimension_numbers = #tpu.dot_dimension_numbers<[1], [0], [0], [1], [0, 0, 1, 1], [], []>} : vector<20x168xbf16>, vector<168x160xbf16>, vector<20x160xf32> -> vector<20x160xf32>
    %92 = arith.addf %84, %91 : vector<20x160xf32>
    %c4_81 = arith.constant 4 : index
    %c0_82 = arith.constant 0 : index
    %c0_83 = arith.constant 0 : index
    %93 = vector.load %arg2[%c4_81, %c0_82, %c0_83] : memref<5x20x56xbf16, #tpu.memory_space<vmem>>, vector<1x20x56xbf16>
    %94 = vector.shape_cast %93 : vector<1x20x56xbf16> to vector<20x56xbf16>
    %cst_84 = arith.constant dense<0.000000e+00> : vector<20x168xf32>
    %95 = tpu.matmul %94, %59, %cst_84 {dimension_numbers = #tpu.dot_dimension_numbers<[1], [0], [0], [1], [0, 0, 1, 1], [], []>} : vector<20x56xbf16>, vector<56x168xbf16>, vector<20x168xf32> -> vector<20x168xf32>
    %96 = arith.truncf %95 : vector<20x168xf32> to vector<20x168xbf16>
    %c4_85 = arith.constant 4 : index
    %c0_86 = arith.constant 0 : index
    %c0_87 = arith.constant 0 : index
    %97 = vector.load %arg3[%c4_85, %c0_86, %c0_87] : memref<5x168x160xbf16, #tpu.memory_space<vmem>>, vector<1x168x160xbf16>
    %98 = vector.shape_cast %97 : vector<1x168x160xbf16> to vector<168x160xbf16>
    %cst_88 = arith.constant dense<0.000000e+00> : vector<20x160xf32>
    %99 = tpu.matmul %96, %98, %cst_88 {dimension_numbers = #tpu.dot_dimension_numbers<[1], [0], [0], [1], [0, 0, 1, 1], [], []>} : vector<20x168xbf16>, vector<168x160xbf16>, vector<20x160xf32> -> vector<20x160xf32>
    %100 = arith.addf %92, %99 : vector<20x160xf32>
    %c0_89 = arith.constant 0 : index
    %c0_90 = arith.constant 0 : index
    %101 = vector.load %arg11[%c0_89, %c0_90] : memref<20x160xf32, #tpu.memory_space<vmem>>, vector<20x160xf32>
    tpu.vector_store %arg11[%c0_89, %c0_90], %100 {strides = array<i32>} : memref<20x160xf32, #tpu.memory_space<vmem>>, vector<20x160xf32>,
    %c168 = arith.constant 168 : index
    %c0_91 = arith.constant 0 : index
    %102 = vector.load %arg6[%c168, %c0_91] : memref<328x168xf32, #tpu.memory_space<vmem>>, vector<160x160xf32>
    %c0_92 = arith.constant 0 : index
    %c0_93 = arith.constant 0 : index
    %103 = vector.load %arg11[%c0_92, %c0_93] : memref<20x160xf32, #tpu.memory_space<vmem>>, vector<20x160xf32>
    %cst_94 = arith.constant dense<0.000000e+00> : vector<160xf32>
    %104 = vector.multi_reduction <add>, %103, %cst_94 [0] : vector<20x160xf32> to vector<160xf32>
    %105 = vector.shape_cast %104 : vector<160xf32> to vector<1x160xf32>
    %cst_95 = arith.constant dense<0.000000e+00> : vector<1x160xf32>
    %106 = tpu.matmul %105, %102, %cst_95 {dimension_numbers = #tpu.dot_dimension_numbers<[1], [0], [0], [1], [0, 0, 1, 1], [], []>} : vector<1x160xf32>, vector<160x160xf32>, vector<1x160xf32> -> vector<1x160xf32>
    %cst_96 = arith.constant 5.000000e-03 : f32
    %107 = vector.broadcast %cst_96 : f32 to vector<1x160xf32>
    %108 = arith.mulf %106, %107 : vector<1x160xf32>
    %109 = vector.broadcast %108 : vector<1x160xf32> to vector<20x160xf32>
    %110 = arith.subf %103, %109 : vector<20x160xf32>
    %111 = arith.mulf %110, %110 : vector<20x160xf32>
    %cst_97 = arith.constant dense<0.000000e+00> : vector<160xf32>
    %112 = vector.multi_reduction <add>, %111, %cst_97 [0] : vector<20x160xf32> to vector<160xf32>
    %113 = vector.shape_cast %112 : vector<160xf32> to vector<1x160xf32>
    %cst_98 = arith.constant dense<0.000000e+00> : vector<1x160xf32>
    %114 = tpu.matmul %113, %102, %cst_98 {dimension_numbers = #tpu.dot_dimension_numbers<[1], [0], [0], [1], [0, 0, 1, 1], [], []>} : vector<1x160xf32>, vector<160x160xf32>, vector<1x160xf32> -> vector<1x160xf32>
    %cst_99 = arith.constant 5.000000e-03 : f32
    %115 = vector.broadcast %cst_99 : f32 to vector<1x160xf32>
    %116 = arith.mulf %114, %115 : vector<1x160xf32>
    %c2_100 = arith.constant 2 : index
    %c0_101 = arith.constant 0 : index
    %117 = vector.load %arg7[%c2_100, %c0_101] : memref<8x168xf32, #tpu.memory_space<vmem>>, vector<1x160xf32>
    %cst_102 = arith.constant 9.99999974E-6 : f32
    %118 = vector.broadcast %cst_102 : f32 to vector<1x160xf32>
    %119 = arith.addf %116, %118 : vector<1x160xf32>
    %120 = math.rsqrt %119 : vector<1x160xf32>
    %121 = arith.mulf %117, %120 : vector<1x160xf32>
    %122 = vector.broadcast %121 : vector<1x160xf32> to vector<20x160xf32>
    %123 = arith.mulf %110, %122 : vector<20x160xf32>
    %c3_103 = arith.constant 3 : index
    %c0_104 = arith.constant 0 : index
    %124 = vector.load %arg7[%c3_103, %c0_104] : memref<8x168xf32, #tpu.memory_space<vmem>>, vector<1x160xf32>
    %125 = vector.broadcast %124 : vector<1x160xf32> to vector<20x160xf32>
    %126 = arith.addf %123, %125 : vector<20x160xf32>
    %cst_105 = arith.constant 0.000000e+00 : f32
    %127 = vector.broadcast %cst_105 : f32 to vector<20x160xf32>
    %128 = arith.maximumf %126, %127 : vector<20x160xf32>
    %129 = arith.truncf %128 : vector<20x160xf32> to vector<20x160xbf16>
    %cst_106 = arith.constant 0.000000e+00 : f32
    %130 = vector.broadcast %cst_106 : f32 to vector<2x128xf32>
    %c0_107 = arith.constant 0 : index
    %c0_108 = arith.constant 0 : index
    %c0_109 = arith.constant 0 : index
    %131 = vector.load %arg4[%c0_107, %c0_108, %c0_109] : memref<5x2x20xbf16, #tpu.memory_space<vmem>>, vector<1x2x20xbf16>
    %132 = vector.shape_cast %131 : vector<1x2x20xbf16> to vector<2x20xbf16>
    %cst_110 = arith.constant dense<0.000000e+00> : vector<2x160xf32>
    %133 = tpu.matmul %132, %129, %cst_110 {dimension_numbers = #tpu.dot_dimension_numbers<[1], [0], [0], [1], [0, 0, 1, 1], [], []>} : vector<2x20xbf16>, vector<20x160xbf16>, vector<2x160xf32> -> vector<2x160xf32>
    %134 = arith.truncf %133 : vector<2x160xf32> to vector<2x160xbf16>
    %c0_111 = arith.constant 0 : index
    %c0_112 = arith.constant 0 : index
    %c0_113 = arith.constant 0 : index
    %135 = vector.load %arg5[%c0_111, %c0_112, %c0_113] : memref<5x160x128xbf16, #tpu.memory_space<vmem>>, vector<1x160x128xbf16>
    %136 = vector.shape_cast %135 : vector<1x160x128xbf16> to vector<160x128xbf16>
    %cst_114 = arith.constant dense<0.000000e+00> : vector<2x128xf32>
    %137 = tpu.matmul %134, %136, %cst_114 {dimension_numbers = #tpu.dot_dimension_numbers<[1], [0], [0], [1], [0, 0, 1, 1], [], []>} : vector<2x160xbf16>, vector<160x128xbf16>, vector<2x128xf32> -> vector<2x128xf32>
    %138 = arith.addf %130, %137 : vector<2x128xf32>
    %c1_115 = arith.constant 1 : index
    %c0_116 = arith.constant 0 : index
    %c0_117 = arith.constant 0 : index
    %139 = vector.load %arg4[%c1_115, %c0_116, %c0_117] : memref<5x2x20xbf16, #tpu.memory_space<vmem>>, vector<1x2x20xbf16>
    %140 = vector.shape_cast %139 : vector<1x2x20xbf16> to vector<2x20xbf16>
    %cst_118 = arith.constant dense<0.000000e+00> : vector<2x160xf32>
    %141 = tpu.matmul %140, %129, %cst_118 {dimension_numbers = #tpu.dot_dimension_numbers<[1], [0], [0], [1], [0, 0, 1, 1], [], []>} : vector<2x20xbf16>, vector<20x160xbf16>, vector<2x160xf32> -> vector<2x160xf32>
    %142 = arith.truncf %141 : vector<2x160xf32> to vector<2x160xbf16>
    %c1_119 = arith.constant 1 : index
    %c0_120 = arith.constant 0 : index
    %c0_121 = arith.constant 0 : index
    %143 = vector.load %arg5[%c1_119, %c0_120, %c0_121] : memref<5x160x128xbf16, #tpu.memory_space<vmem>>, vector<1x160x128xbf16>
    %144 = vector.shape_cast %143 : vector<1x160x128xbf16> to vector<160x128xbf16>
    %cst_122 = arith.constant dense<0.000000e+00> : vector<2x128xf32>
    %145 = tpu.matmul %142, %144, %cst_122 {dimension_numbers = #tpu.dot_dimension_numbers<[1], [0], [0], [1], [0, 0, 1, 1], [], []>} : vector<2x160xbf16>, vector<160x128xbf16>, vector<2x128xf32> -> vector<2x128xf32>
    %146 = arith.addf %138, %145 : vector<2x128xf32>
    %c2_123 = arith.constant 2 : index
    %c0_124 = arith.constant 0 : index
    %c0_125 = arith.constant 0 : index
    %147 = vector.load %arg4[%c2_123, %c0_124, %c0_125] : memref<5x2x20xbf16, #tpu.memory_space<vmem>>, vector<1x2x20xbf16>
    %148 = vector.shape_cast %147 : vector<1x2x20xbf16> to vector<2x20xbf16>
    %cst_126 = arith.constant dense<0.000000e+00> : vector<2x160xf32>
    %149 = tpu.matmul %148, %129, %cst_126 {dimension_numbers = #tpu.dot_dimension_numbers<[1], [0], [0], [1], [0, 0, 1, 1], [], []>} : vector<2x20xbf16>, vector<20x160xbf16>, vector<2x160xf32> -> vector<2x160xf32>
    %150 = arith.truncf %149 : vector<2x160xf32> to vector<2x160xbf16>
    %c2_127 = arith.constant 2 : index
    %c0_128 = arith.constant 0 : index
    %c0_129 = arith.constant 0 : index
    %151 = vector.load %arg5[%c2_127, %c0_128, %c0_129] : memref<5x160x128xbf16, #tpu.memory_space<vmem>>, vector<1x160x128xbf16>
    %152 = vector.shape_cast %151 : vector<1x160x128xbf16> to vector<160x128xbf16>
    %cst_130 = arith.constant dense<0.000000e+00> : vector<2x128xf32>
    %153 = tpu.matmul %150, %152, %cst_130 {dimension_numbers = #tpu.dot_dimension_numbers<[1], [0], [0], [1], [0, 0, 1, 1], [], []>} : vector<2x160xbf16>, vector<160x128xbf16>, vector<2x128xf32> -> vector<2x128xf32>
    %154 = arith.addf %146, %153 : vector<2x128xf32>
    %c3_131 = arith.constant 3 : index
    %c0_132 = arith.constant 0 : index
    %c0_133 = arith.constant 0 : index
    %155 = vector.load %arg4[%c3_131, %c0_132, %c0_133] : memref<5x2x20xbf16, #tpu.memory_space<vmem>>, vector<1x2x20xbf16>
    %156 = vector.shape_cast %155 : vector<1x2x20xbf16> to vector<2x20xbf16>
    %cst_134 = arith.constant dense<0.000000e+00> : vector<2x160xf32>
    %157 = tpu.matmul %156, %129, %cst_134 {dimension_numbers = #tpu.dot_dimension_numbers<[1], [0], [0], [1], [0, 0, 1, 1], [], []>} : vector<2x20xbf16>, vector<20x160xbf16>, vector<2x160xf32> -> vector<2x160xf32>
    %158 = arith.truncf %157 : vector<2x160xf32> to vector<2x160xbf16>
    %c3_135 = arith.constant 3 : index
    %c0_136 = arith.constant 0 : index
    %c0_137 = arith.constant 0 : index
    %159 = vector.load %arg5[%c3_135, %c0_136, %c0_137] : memref<5x160x128xbf16, #tpu.memory_space<vmem>>, vector<1x160x128xbf16>
    %160 = vector.shape_cast %159 : vector<1x160x128xbf16> to vector<160x128xbf16>
    %cst_138 = arith.constant dense<0.000000e+00> : vector<2x128xf32>
    %161 = tpu.matmul %158, %160, %cst_138 {dimension_numbers = #tpu.dot_dimension_numbers<[1], [0], [0], [1], [0, 0, 1, 1], [], []>} : vector<2x160xbf16>, vector<160x128xbf16>, vector<2x128xf32> -> vector<2x128xf32>
    %162 = arith.addf %154, %161 : vector<2x128xf32>
    %c4_139 = arith.constant 4 : index
    %c0_140 = arith.constant 0 : index
    %c0_141 = arith.constant 0 : index
    %163 = vector.load %arg4[%c4_139, %c0_140, %c0_141] : memref<5x2x20xbf16, #tpu.memory_space<vmem>>, vector<1x2x20xbf16>
    %164 = vector.shape_cast %163 : vector<1x2x20xbf16> to vector<2x20xbf16>
    %cst_142 = arith.constant dense<0.000000e+00> : vector<2x160xf32>
    %165 = tpu.matmul %164, %129, %cst_142 {dimension_numbers = #tpu.dot_dimension_numbers<[1], [0], [0], [1], [0, 0, 1, 1], [], []>} : vector<2x20xbf16>, vector<20x160xbf16>, vector<2x160xf32> -> vector<2x160xf32>
    %166 = arith.truncf %165 : vector<2x160xf32> to vector<2x160xbf16>
    %c4_143 = arith.constant 4 : index
    %c0_144 = arith.constant 0 : index
    %c0_145 = arith.constant 0 : index
    %167 = vector.load %arg5[%c4_143, %c0_144, %c0_145] : memref<5x160x128xbf16, #tpu.memory_space<vmem>>, vector<1x160x128xbf16>
    %168 = vector.shape_cast %167 : vector<1x160x128xbf16> to vector<160x128xbf16>
    %cst_146 = arith.constant dense<0.000000e+00> : vector<2x128xf32>
    %169 = tpu.matmul %166, %168, %cst_146 {dimension_numbers = #tpu.dot_dimension_numbers<[1], [0], [0], [1], [0, 0, 1, 1], [], []>} : vector<2x160xbf16>, vector<160x128xbf16>, vector<2x128xf32> -> vector<2x128xf32>
    %170 = arith.addf %162, %169 : vector<2x128xf32>
    %c4_147 = arith.constant 4 : index
    %c0_148 = arith.constant 0 : index
    %171 = vector.load %arg7[%c4_147, %c0_148] : memref<8x168xf32, #tpu.memory_space<vmem>>, vector<1x128xf32>
    %172 = vector.broadcast %171 : vector<1x128xf32> to vector<2x128xf32>
    %173 = arith.addf %170, %172 : vector<2x128xf32>
    %cst_149 = arith.constant 0.000000e+00 : f32
    %174 = vector.broadcast %cst_149 : f32 to vector<2x128xf32>
    %175 = arith.maximumf %173, %174 : vector<2x128xf32>
    %176 = arith.truncf %175 : vector<2x128xf32> to vector<2x128xbf16>
    %c0_150 = arith.constant 0 : index
    %c0_151 = arith.constant 0 : index
    %177 = vector.load %arg8[%c0_150, %c0_151] : memref<256x128xbf16, #tpu.memory_space<vmem>>, vector<128x128xbf16>
    %c128 = arith.constant 128 : index
    %c0_152 = arith.constant 0 : index
    %178 = vector.load %arg8[%c128, %c0_152] : memref<256x128xbf16, #tpu.memory_space<vmem>>, vector<128x128xbf16>
    %cst_153 = arith.constant dense<0.000000e+00> : vector<2x128xf32>
    %179 = tpu.matmul %176, %177, %cst_153 {dimension_numbers = #tpu.dot_dimension_numbers<[1], [0], [0], [1], [0, 0, 1, 1], [], []>} : vector<2x128xbf16>, vector<128x128xbf16>, vector<2x128xf32> -> vector<2x128xf32>
    %c5 = arith.constant 5 : index
    %c0_154 = arith.constant 0 : index
    %180 = vector.load %arg7[%c5, %c0_154] : memref<8x168xf32, #tpu.memory_space<vmem>>, vector<1x128xf32>
    %181 = vector.broadcast %180 : vector<1x128xf32> to vector<2x128xf32>
    %182 = arith.addf %179, %181 : vector<2x128xf32>
    %cst_155 = arith.constant 0.000000e+00 : f32
    %183 = vector.broadcast %cst_155 : f32 to vector<2x128xf32>
    %184 = arith.maximumf %182, %183 : vector<2x128xf32>
    %185 = arith.truncf %184 : vector<2x128xf32> to vector<2x128xbf16>
    %cst_156 = arith.constant dense<0.000000e+00> : vector<2x128xf32>
    %186 = tpu.matmul %185, %178, %cst_156 {dimension_numbers = #tpu.dot_dimension_numbers<[1], [0], [0], [1], [0, 0, 1, 1], [], []>} : vector<2x128xbf16>, vector<128x128xbf16>, vector<2x128xf32> -> vector<2x128xf32>
    %c6 = arith.constant 6 : index
    %c0_157 = arith.constant 0 : index
    %187 = vector.load %arg7[%c6, %c0_157] : memref<8x168xf32, #tpu.memory_space<vmem>>, vector<1x128xf32>
    %188 = vector.broadcast %187 : vector<1x128xf32> to vector<2x128xf32>
    %189 = arith.addf %186, %188 : vector<2x128xf32>
    %cst_158 = arith.constant dense<0xFF800000> : vector<2xf32>
    %190 = vector.multi_reduction <maximumf>, %189, %cst_158 [1] : vector<2x128xf32> to vector<2xf32>
    %191 = vector.shape_cast %190 : vector<2xf32> to vector<2x1xf32>
    %192 = vector.broadcast %191 : vector<2x1xf32> to vector<2x128xf32>
    %193 = arith.subf %189, %192 : vector<2x128xf32>
    %194 = math.exp %193 : vector<2x128xf32>
    %cst_159 = arith.constant dense<0.000000e+00> : vector<2xf32>
    %195 = vector.multi_reduction <add>, %194, %cst_159 [1] : vector<2x128xf32> to vector<2xf32>
    %196 = vector.shape_cast %195 : vector<2xf32> to vector<2x1xf32>
    %197 = vector.broadcast %196 : vector<2x1xf32> to vector<2x128xf32>
    %198 = arith.divf %194, %197 : vector<2x128xf32>
    %c0_160 = arith.constant 0 : index
    %c0_161 = arith.constant 0 : index
    %199 = vector.load %arg9[%c0_160, %c0_161] : memref<2x128xf32, #tpu.memory_space<vmem>>, vector<2x128xf32>
    tpu.vector_store %arg9[%c0_160, %c0_161], %198 {strides = array<i32>} : memref<2x128xf32, #tpu.memory_space<vmem>>, vector<2x128xf32>,
    return
  }
}

</mosaic_0001>

<bundles_post_ra>
// kernel: tile.23
= control target key start
LH: loop header
LB: loop body
LE: loop exit
PB: predicated region body
PF: predicated region fallthrough
CT: control target
= control target key end

     0   :  { %s40_s0 = inlined_call_operand.vmem [shape: f32[6], index: 0, kind: input, shape index: {}]   ;;  %s41_s1 = inlined_call_operand.vmem [shape: f32[28,6], index: 1, kind: output, shape index: {}]  }
   0x1   :  { %v4_v0 = vld [vmem:[%s40_s0] ss:$0 sm:$0xff] }
   0x2   :  { %5 = vst [vmem:[%s41_s1] sm:$0xff] %v4_v0  ;;  %12 = vst [vmem:[%s41_s1 + $0x8] sm:$0xff] %v4_v0 }
   0x3   :  { %13 = vst [vmem:[%s41_s1 + $0x10] sm:$0xff] %v4_v0  ;;  %14 = vst [vmem:[%s41_s1 + $0x18] sm:$0xff] %v4_v0 }

// kernel: tile.33
= control target key start
LH: loop header
LB: loop body
LE: loop exit
PB: predicated region body
PF: predicated region fallthrough
CT: control target
= control target key end

     0   :  { %s28_s0 = inlined_call_operand.vmem [shape: f32[16], index: 0, kind: input, shape index: {}]   ;;  %s29_s1 = inlined_call_operand.vmem [shape: f32[10,16], index: 1, kind: output, shape index: {}]  }
   0x1   :  { %v4_v0 = vld [vmem:[%s28_s0] ss:$0 sm:$0xff] }
   0x2   :  { %5 = vst [vmem:[%s29_s1] sm:$0xff] %v4_v0  ;;  %8 = vst [vmem:[%s29_s1 + $0x8] sm:$0xff] %v4_v0 }

// kernel: lenet5_forward.1
= control target key start
LH: loop header
LB: loop body
LE: loop exit
PB: predicated region body
PF: predicated region fallthrough
CT: control target
= control target key end

     0   :  { %v5113_v2 = vmov 0   ;;  %vm96_vm0 = vcmask 261120   ;;  %s6875_s0 = inlined_call_operand.vmem [shape: bf16[5,56,32], index: 0, kind: input, shape index: {}]   ;;  %s6876_s1 = inlined_call_operand.vmem [shape: bf16[5,32,168], index: 1, kind: input, shape index: {}]   ;;  %s6877_s2 = inlined_call_operand.vmem [shape: bf16[5,20,56], index: 2, kind: input, shape index: {}]   ;;  %s6878_s3 = inlined_call_operand.vmem [shape: bf16[5,168,160], index: 3, kind: input, shape index: {}]   ;;  %s6879_s4 = inlined_call_operand.vmem [shape: bf16[5,2,20], index: 4, kind: input, shape index: {}]   ;;  %s6880_s5 = inlined_call_operand.vmem [shape: bf16[5,160,128], index: 5, kind: input, shape index: {}]   ;;  %s6881_s6 = inlined_call_operand.vmem [shape: f32[328,168], index: 6, kind: input, shape index: {}]   ;;  %s6882_s7 = inlined_call_operand.vmem [shape: f32[8,168], index: 7, kind: input, shape index: {}]   ;;  %s6883_s8 = inlined_call_operand.vmem [shape: bf16[256,128], index: 8, kind: input, shape index: {}]   ;;  %s6884_s9 = inlined_call_operand.hbm [shape: f32[2,128], index: 9, kind: output, shape index: {}]  }
   0x1   :  { %v4791_v0 = vld [vmem:[%s6876_s1 + $0x24] ss:$8 sps:$4 sm:$0xff]   ;;  %v4793_v1 = vld [vmem:[%s6876_s1 + $0x20] ss:$8 sps:$4 sm:$0xff]   ;;  %141 = vmatprep.mubr.bf16.mxu0 %v5113_v2  ;;  %v4794_v3 = vld [vmem:[%s6876_s1 + $0x34] ss:$8 sps:$4 sm:$0xff]  }
   0x2   :  { %109 = vmatprep.subr.bf16.mxu0 %v4791_v0  ;;  %v4796_v4 = vld [vmem:[%s6876_s1 + $0x30] ss:$8 sps:$4 sm:$0xff]   ;;  %v4800_v5 = vld [vmem:[%s6876_s1 + $0x4] ss:$8 sps:$4 sm:$0xff]   ;;  %v4797_v6 = vld [vmem:[%s6875_s0 + $0x1c] sm:$0xff]  }
   0x3   :  { %110 = vmatpush1.bf16.msra.mxu0 %v4793_v1  ;;  %v4798_v7 = vld [vmem:[%s6876_s1] ss:$8 sps:$4 sm:$0xff]   ;;  %v4805_v8 = vld [vmem:[%s6876_s1 + $0x14] ss:$8 sps:$4 sm:$0xff]   ;;  %v4803_v9 = vld [vmem:[%s6876_s1 + $0x10] ss:$8 sps:$4 sm:$0xff]  }
   0x4   :  { %111 = vmatprep.subr.bf16.mxu0 %v4794_v3  ;;  %v4810_v10 = vld [vmem:[%s6876_s1 + $0x44] ss:$8 sps:$4 sm:$0xff]   ;;  %v4806_v13 = vld [vmem:[%s6875_s0 + $0x34] ss:$0 sps:$4 sm:$0xff]   ;;  %v4808_v15 = vld [vmem:[%s6876_s1 + $0x40] ss:$8 sps:$4 sm:$0xff]  }
   0x5   :  { %v4801_v11 = vld [vmem:[%s6875_s0 + $0x24] sm:$0xff]   ;;  %v4802_v12 = vld [vmem:[%s6875_s0 + $0x2c] sm:$0xff]   ;;  %v4815_v16 = vld [vmem:[%s6876_s1 + $0x54] ss:$8 sps:$4 sm:$0xff]  }
   0x6   :  { %v4807_v14 = vld [vmem:[%s6875_s0] sm:$0xff]   ;;  %v4813_v17 = vld [vmem:[%s6876_s1 + $0x50] ss:$8 sps:$4 sm:$0xff]   ;;  %v4811_v19 = vld [vmem:[%s6875_s0 + $0x8] sm:$0xff]  }
   0x7   :  { %112 = vmatpush1.bf16.msra.mxu0 %v4796_v4  ;;  %v4820_v18 = vld [vmem:[%s6876_s1 + $0x64] ss:$8 sps:$4 sm:$0xff]   ;;  %v4812_v20 = vld [vmem:[%s6875_s0 + $0x10] sm:$0xff]   ;;  %v4816_v21 = vld [vmem:[%s6875_s0 + $0x18] ss:$0 sps:$4 sm:$0xff]  }
   0x8   :  { %230 = vmatprep.subr.bf16.mxu0 %v4800_v5  ;;  %v4817_v22 = vld [vmem:[%s6875_s0 + $0x38] sm:$0xff]   ;;  %v4818_v23 = vld [vmem:[%s6876_s1 + $0x60] ss:$8 sps:$4 sm:$0xff]   ;;  %v4830_v26 = vld [vmem:[%s6876_s1 + $0x84] ss:$8 sps:$4 sm:$0xff]  }
   0x9   :  { %v4825_v24 = vld [vmem:[%s6876_s1 + $0x74] ss:$8 sps:$4 sm:$0xff]   ;;  %v4823_v25 = vld [vmem:[%s6876_s1 + $0x70] ss:$8 sps:$4 sm:$0xff]   ;;  %v4821_v27 = vld [vmem:[%s6875_s0 + $0x40] sm:$0xff]  }
   0xa   :  { %3969 = vmatmul.mubr.msk.bf16.vlgmr.msra.gmra.mrb[0].mxu0 %vm96_vm0, %v4797_v6  ;;  %v4822_v28 = vld [vmem:[%s6875_s0 + $0x48] sm:$0xff]   ;;  %v4826_v29 = vld [vmem:[%s6875_s0 + $0x50] ss:$0 sps:$4 sm:$0xff]   ;;  %v4827_v30 = vld [vmem:[%s6875_s0 + $0x54] sm:$0xff]  }
   0xb   :  { %231 = vmatpush1.bf16.msra.mxu0 %v4798_v7  ;;  %151 = vmatprep.mubr.bf16.mxu0 %v5113_v2  ;;  %v4828_v31 = vld [vmem:[%s6876_s1 + $0x80] ss:$8 sps:$4 sm:$0xff]   ;;  %v4835_v32 = vld [vmem:[%s6876_s1 + $0x94] ss:$8 sps:$4 sm:$0xff]   ;;  %v4833_v33 = vld [vmem:[%s6876_s1 + $0x90] ss:$8 sps:$4 sm:$0xff]  }
   0xc   :  { %232 = vmatprep.subr.bf16.mxu0 %v4805_v8  ;;  %v4831_v34 = vld [vmem:[%s6875_s0 + $0x5c] sm:$0xff]  }
   0xf   :  { %233 = vmatpush1.bf16.msra.mxu0 %v4803_v9 }
  0x10   :  { %364 = vmatprep.subr.bf16.mxu0 %v4810_v10 }
  0x12   :  { %3970 = vmatmul.mubr.msk.bf16.gmra.mrb[4].mxu0 %vm96_vm0, %v4801_v11 }
  0x13   :  { %161 = vmatprep.mubr.bf16.mxu0 %v5113_v2 }
  0x1a   :  { %3971 = vmatmul.mubr.msk.bf16.gmra.mrb[8].mxu0 %vm96_vm0, %v4802_v12 }
  0x1b   :  { %171 = vmatprep.mubr.bf16.mxu0 %v5113_v2 }
  0x22   :  { %3972 = vmatmul.mubr.msk.bf16.gmra.mrb[12].mxu0 %vm96_vm0, %v4806_v13 }
  0x23   :  { %262 = vmatprep.mubr.bf16.mxu0 %v5113_v2 }
  0x2a   :  { %3981 = vmatmul.mubr.msk.bf16.vlgmr.msra.gmra.mrb[0].mxu0 %vm96_vm0, %v4807_v14 }
  0x2b   :  { %365 = vmatpush1.bf16.msra.mxu0 %v4808_v15  ;;  %272 = vmatprep.mubr.bf16.mxu0 %v5113_v2 }
  0x2c   :  { %366 = vmatprep.subr.bf16.mxu0 %v4815_v16 }
  0x2f   :  { %367 = vmatpush1.bf16.msra.mxu0 %v4813_v17 }
  0x30   :  { %512 = vmatprep.subr.bf16.mxu0 %v4820_v18 }
  0x32   :  { %3982 = vmatmul.mubr.msk.bf16.gmra.mrb[4].mxu0 %vm96_vm0, %v4811_v19 }
  0x33   :  { %282 = vmatprep.mubr.bf16.mxu0 %v5113_v2 }
  0x3a   :  { %3983 = vmatmul.mubr.msk.bf16.gmra.mrb[8].mxu0 %vm96_vm0, %v4812_v20 }
  0x3b   :  { %292 = vmatprep.mubr.bf16.mxu0 %v5113_v2 }
  0x42   :  { %3984 = vmatmul.mubr.msk.bf16.gmra.mrb[12].mxu0 %vm96_vm0, %v4816_v21 }
  0x43   :  { %396 = vmatprep.mubr.bf16.mxu0 %v5113_v2 }
  0x4a   :  { %4004 = vmatmul.mubr.msk.bf16.vlgmr.msra.gmra.mrb[0].mxu0 %vm96_vm0, %v4817_v22 }
  0x4b   :  { %513 = vmatpush1.bf16.msra.mxu0 %v4818_v23  ;;  %406 = vmatprep.mubr.bf16.mxu0 %v5113_v2 }
  0x4c   :  { %514 = vmatprep.subr.bf16.mxu0 %v4825_v24 }
  0x4f   :  { %515 = vmatpush1.bf16.msra.mxu0 %v4823_v25 }
  0x50   :  { %660 = vmatprep.subr.bf16.mxu0 %v4830_v26 }
  0x52   :  { %4005 = vmatmul.mubr.msk.bf16.gmra.mrb[4].mxu0 %vm96_vm0, %v4821_v27 }
  0x53   :  { %416 = vmatprep.mubr.bf16.mxu0 %v5113_v2 }
  0x5a   :  { %4006 = vmatmul.mubr.msk.bf16.gmra.mrb[8].mxu0 %vm96_vm0, %v4822_v28 }
  0x5b   :  { %426 = vmatprep.mubr.bf16.mxu0 %v5113_v2 }
  0x62   :  { %4007 = vmatmul.mubr.msk.bf16.gmra.mrb[12].mxu0 %vm96_vm0, %v4826_v29 }
  0x63   :  { %544 = vmatprep.mubr.bf16.mxu0 %v5113_v2 }
  0x6a   :  { %4027 = vmatmul.mubr.msk.bf16.vlgmr.msra.gmra.mrb[0].mxu0 %vm96_vm0, %v4827_v30 }
  0x6b   :  { %661 = vmatpush1.bf16.msra.mxu0 %v4828_v31  ;;  %554 = vmatprep.mubr.bf16.mxu0 %v5113_v2 }
  0x6c   :  { %662 = vmatprep.subr.bf16.mxu0 %v4835_v32 }
  0x6f   :  { %663 = vmatpush1.bf16.msra.mxu0 %v4833_v33 }
  0x72   :  { %4028 = vmatmul.mubr.msk.bf16.gmra.mrb[4].mxu0 %vm96_vm0, %v4831_v34 }
  0x73   :  { %14 = vsyncpa [#allocation5], 0  ;;  %564 = vmatprep.mubr.bf16.mxu0 %v5113_v2  ;;  %v4832_v35 = vld [vmem:[%s6875_s0 + $0x64] sm:$0xff]   ;;  %v4836_v36 = vld [vmem:[%s6875_s0 + $0x6c] ss:$0 sps:$4 sm:$0xff]   ;;  %vm746_vm1 = vcmask 326656  }
  0x74   :  { %v4837_v37 = vld [vmem:[%s6875_s0 + $0x70] sm:$0xff]   ;;  %v4838_v38 = vld [vmem:[%s6875_s0 + $0x78] sm:$0xff]   ;;  %v4839_v39 = vld [vmem:[%s6875_s0 + $0x80] sm:$0xff]   ;;  %vm1182_vm2 = vcmask 1043456   ;;  %vm1175_vm3 = vcmask 457728   ;;  %vm2508_vm4 = vcmask 257024  }
  0x75   :  { %v4840_v40 = vld [vmem:[%s6875_s0 + $0x88] ss:$0 sps:$4 sm:$0xff]   ;;  %v763_v42 = vld [vmem:[%s6881_s6 + $0x18] sm:$0xff]  ;;  %v760_v44 = vld [vmem:[%s6881_s6] sm:$0xff]  ;;  %vm2844_vm5 = vcmask 1041408   ;;  %vm2840_vm6 = vcmask 162816  }
  0x76   :  { %v761_v41 = vld [vmem:[%s6881_s6 + $0x8] sm:$0xff]  ;;  %v762_v45 = vld [vmem:[%s6881_s6 + $0x10] sm:$0xff]  ;;  %v767_v48 = vld [vmem:[%s6881_s6 + $0x38] sm:$0xff]  ;;  %vm5116_vm7 = vmmov 0  }
  0x77   :  { %v5335_v43 = vpack.c.bf16 %v763_v42, %v761_v41  ;;  %v5343_v46 = vpack.c.bf16 %v762_v45, %v760_v44  ;;  %v765_v47 = vld [vmem:[%s6881_s6 + $0x28] sm:$0xff]  ;;  %v764_v50 = vld [vmem:[%s6881_s6 + $0x20] sm:$0xff]  ;;  %v766_v51 = vld [vmem:[%s6881_s6 + $0x30] sm:$0xff] }
  0x78   :  { %v5353_v49 = vpack.c.bf16 %v767_v48, %v765_v47  ;;  %v5361_v52 = vpack.c.bf16 %v766_v51, %v764_v50  ;;  %v769_v53 = vld [vmem:[%s6881_s6 + $0x48] sm:$0xff]  ;;  %v771_v54 = vld [vmem:[%s6881_s6 + $0x58] sm:$0xff]  ;;  %v768_v56 = vld [vmem:[%s6881_s6 + $0x40] sm:$0xff] }
  0x79   :  { %4531 = vmatprep.subr.bf16.mxu1 %v5335_v43  ;;  %v5371_v55 = vpack.c.bf16 %v771_v54, %v769_v53  ;;  %v770_v57 = vld [vmem:[%s6881_s6 + $0x50] sm:$0xff]  ;;  %v773_v59 = vld [vmem:[%s6881_s6 + $0x68] sm:$0xff]  ;;  %v775_v60 = vld [vmem:[%s6881_s6 + $0x78] sm:$0xff] }
  0x7a   :  { %4029 = vmatmul.mubr.msk.bf16.gmra.mrb[8].mxu0 %vm96_vm0, %v4832_v35  ;;  %4533 = vmatpush1.bf16.msra.mxu1 %v5343_v46  ;;  %v5379_v58 = vpack.c.bf16 %v770_v57, %v768_v56  ;;  %v5389_v61 = vpack.c.bf16 %v775_v60, %v773_v59  ;;  %v772_v62 = vld [vmem:[%s6881_s6 + $0x60] sm:$0xff]  ;;  %v774_v63 = vld [vmem:[%s6881_s6 + $0x70] sm:$0xff]  ;;  %v777_v1 = vld [vmem:[%s6881_s6 + $0x88] sm:$0xff] }
  0x7b   :  { %574 = vmatprep.mubr.bf16.mxu0 %v5113_v2  ;;  %4535 = vmatprep.subr.bf16.mxu1 %v5353_v49  ;;  %v5397_v0 = vpack.c.bf16 %v774_v63, %v772_v62  ;;  %v779_v3 = vld [vmem:[%s6881_s6 + $0x98] sm:$0xff]  ;;  %v776_v5 = vld [vmem:[%s6881_s6 + $0x80] sm:$0xff]  ;;  %v778_v6 = vld [vmem:[%s6881_s6 + $0x90] sm:$0xff] }
  0x7c   :  { %v5407_v4 = vpack.c.bf16 %v779_v3, %v777_v1  ;;  %v5415_v7 = vpack.c.bf16 %v778_v6, %v776_v5  ;;  %v781_v8 = vld [vmem:[%s6881_s6 + $0xa8] sm:$0xff]  ;;  %v783_v9 = vld [vmem:[%s6881_s6 + $0xb8] sm:$0xff]  ;;  %v780_v11 = vld [vmem:[%s6881_s6 + $0xa0] sm:$0xff] }
  0x7d   :  { %v5425_v10 = vpack.c.bf16 %v783_v9, %v781_v8  ;;  %v782_v12 = vld [vmem:[%s6881_s6 + $0xb0] sm:$0xff]  ;;  %v785_v14 = vld [vmem:[%s6881_s6 + $0xc8] sm:$0xff]  ;;  %v787_v15 = vld [vmem:[%s6881_s6 + $0xd8] sm:$0xff] }
  0x7e   :  { %4537 = vmatpush1.bf16.msra.mxu1 %v5361_v52  ;;  %v5433_v13 = vpack.c.bf16 %v782_v12, %v780_v11  ;;  %v784_v16 = vld [vmem:[%s6881_s6 + $0xc0] sm:$0xff]  ;;  %v5445_v17 = vpack.c.bf16 %v787_v15, %v785_v14  ;;  %v786_v18 = vld [vmem:[%s6881_s6 + $0xd0] sm:$0xff]  ;;  %v789_v19 = vld [vmem:[%s6881_s6 + $0xe8] sm:$0xff] }
  0x7f   :  { %4539 = vmatprep.subr.bf16.mxu1 %v5371_v55  ;;  %v791_v20 = vld [vmem:[%s6881_s6 + $0xf8] sm:$0xff]  ;;  %v5457_v21 = vpack.c.bf16 %v786_v18, %v784_v16  ;;  %v788_v23 = vld [vmem:[%s6881_s6 + $0xe0] sm:$0xff]  ;;  %v790_v24 = vld [vmem:[%s6881_s6 + $0xf0] sm:$0xff] }
  0x80   :  { %v5460_v22 = vpack.c.bf16 %v791_v20, %v789_v19  ;;  %v793_v25 = vld [vmem:[%s6881_s6 + $0x108] sm:$0xff]  ;;  %v795_v26 = vld [vmem:[%s6881_s6 + $0x118] sm:$0xff]  ;;  %v5475_v27 = vpack.c.bf16 %v790_v24, %v788_v23  ;;  %v792_v29 = vld [vmem:[%s6881_s6 + $0x100] sm:$0xff] }
  0x81   :  { %v5478_v28 = vpack.c.bf16 %v795_v26, %v793_v25  ;;  %v794_v30 = vld [vmem:[%s6881_s6 + $0x110] sm:$0xff]  ;;  %v797_v31 = vld [vmem:[%s6881_s6 + $0x128] sm:$0xff]  ;;  %v799_v32 = vld [vmem:[%s6881_s6 + $0x138] sm:$0xff] }
  0x82   :  { %4030 = vmatmul.mubr.msk.bf16.gmra.mrb[12].mxu0 %vm96_vm0, %v4836_v36  ;;  %4541 = vmatpush1.bf16.msra.mxu1 %v5379_v58  ;;  %v5493_v33 = vpack.c.bf16 %v794_v30, %v792_v29  ;;  %v5496_v34 = vpack.c.bf16 %v799_v32, %v797_v31  ;;  %v796_v35 = vld [vmem:[%s6881_s6 + $0x120] sm:$0xff]  ;;  %v798_v36 = vld [vmem:[%s6881_s6 + $0x130] sm:$0xff] }
  0x83   :  { %692 = vmatprep.mubr.bf16.mxu0 %v5113_v2  ;;  %4543 = vmatprep.subr.bf16.mxu1 %v5389_v61 }
  0x86   :  { %4545 = vmatpush1.bf16.msra.mxu1 %v5397_v0 }
  0x87   :  { %4547 = vmatprep.subr.bf16.mxu1 %v5407_v4 }
  0x8a   :  { %4050 = vmatmul.mubr.msk.bf16.vlgmr.msra.gmra.mrb[0].mxu0 %vm96_vm0, %v4837_v37  ;;  %4549 = vmatpush1.bf16.msra.mxu1 %v5415_v7  ;;  %v5505_v37 = vpack.c.bf16 %v798_v36, %v796_v35 }
  0x8b   :  { %702 = vmatprep.mubr.bf16.mxu0 %v5113_v2  ;;  %4551 = vmatprep.subr.bf16.mxu1 %v5425_v10 }
  0x8e   :  { %4553 = vmatpush1.bf16.msra.mxu1 %v5433_v13 }
  0x8f   :  { %4555 = vmatprep.subr.bf16.mxu1 %v5445_v17 }
  0x92   :  { %4051 = vmatmul.mubr.msk.bf16.gmra.mrb[4].mxu0 %vm96_vm0, %v4838_v38  ;;  %4557 = vmatpush1.bf16.msra.mxu1 %v5457_v21  ;;  %v5511_v38 = vld [vmem:[%s6881_s6 + $0x148] sm:$0xff] }
  0x93   :  { %712 = vmatprep.mubr.bf16.mxu0 %v5113_v2  ;;  %4559 = vmatprep.subr.bf16.mxu1 %v5460_v22 }
  0x96   :  { %4561 = vmatpush1.bf16.msra.mxu1 %v5475_v27 }
  0x97   :  { %4563 = vmatprep.subr.bf16.mxu1 %v5478_v28 }
  0x9a   :  { %4052 = vmatmul.mubr.msk.bf16.gmra.mrb[8].mxu0 %vm96_vm0, %v4839_v39  ;;  %4565 = vmatpush1.bf16.msra.mxu1 %v5493_v33  ;;  %v5518_v39 = vld [vmem:[%s6881_s6 + $0x140] sm:$0xff] }
  0x9b   :  { %722 = vmatprep.mubr.bf16.mxu0 %v5113_v2  ;;  %4567 = vmatprep.subr.bf16.mxu1 %v5496_v34 }
  0x9e   :  { %4569 = vmatpush1.bf16.msra.mxu1 %v5505_v37 }
  0x9f   :  { %890 = vmatprep.subr.mxu1 %v5511_v38 }
  0xa2   :  { %4053 = vmatmul.mubr.msk.bf16.gmra.mrb[12].mxu0 %vm96_vm0, %v4840_v40  ;;  %891 = vmatpush1.msra.mxu1 %v5518_v39 }
  0xa3   :  { %1746 = vmatprep.mubr.bf16.mxu0 %v5113_v2  ;;  %4571 = vmatprep.subr.bf16.mxu1 %v5335_v43 }
 0x15d   :  { %v5522_v40 = vpop.f32.mrb[0].mxu0 }
 0x15e   :  { %v696_v41 = vpop.f32.mrb[1].mxu0 }
 0x15f   :  { %747 = vst.msk [vmem:[#allocation2 + $0x8] sm:$0xff] %vm746_vm1, %v696_v41  ;;  %v5525_v42 = vpop.f32.mrb[2].mxu0 }
 0x160   :  { %v700_v44 = vpop.f32.mrb[3].mxu0  ;;  %v816_v45 = vadd.f32 %v5525_v42, %v5522_v40 }
 0x161   :  { %749 = vst.msk [vmem:[#allocation2 + $0x18] sm:$0xff] %vm746_vm1, %v700_v44 }
 0x165   :  { %v5530_v47 = vpop.f32.mrb[4].mxu0 }
 0x166   :  { %v706_v48 = vpop.f32.mrb[5].mxu0  ;;  %v817_v50 = vadd.f32 %v816_v45, %v5530_v47  ;;  %v5542_v59 = vld [vmem:[#allocation2 + $0x8] sm:$0xff] }
 0x167   :  { %751 = vst.msk [vmem:[#allocation2 + $0x28] sm:$0xff] %vm746_vm1, %v706_v48  ;;  %v5534_v43 = vpop.f32.mrb[6].mxu0  ;;  %v828_v6 = vsel %vm746_vm1, %v5542_v59, 0.0 }
 0x168   :  { %v710_v51 = vpop.f32.mrb[7].mxu0  ;;  %v818_v53 = vadd.f32 %v817_v50, %v5534_v43  ;;  %v5538_v54 = vld [vmem:[#allocation2 + $0x18] sm:$0xff] }
 0x169   :  { %753 = vst.msk [vmem:[#allocation2 + $0x38] sm:$0xff] %vm746_vm1, %v710_v51  ;;  %v829_v1 = vsel %vm746_vm1, %v5538_v54, 0.0 }
 0x16a   :  { %v830_v11 = vadd.f32 %v829_v1, %v828_v6 }
 0x16d   :  { %v5540_v56 = vpop.f32.mrb[8].mxu0 }
 0x16e   :  { %v716_v57 = vpop.f32.mrb[9].mxu0  ;;  %v5544_v60 = vld [vmem:[#allocation2 + $0x28] sm:$0xff]  ;;  %v819_v62 = vadd.f32 %v818_v53, %v5540_v56 }
 0x16f   :  { %755 = vst.msk [vmem:[#allocation2 + $0x48] sm:$0xff] %vm746_vm1, %v716_v57  ;;  %v5548_v63 = vpop.f32.mrb[10].mxu0  ;;  %v831_v8 = vsel %vm746_vm1, %v5544_v60, 0.0 }
 0x170   :  { %v720_v3 = vpop.f32.mrb[11].mxu0  ;;  %v820_v5 = vadd.f32 %v819_v62, %v5548_v63  ;;  %v5558_v9 = vld [vmem:[#allocation2 + $0x38] sm:$0xff]  ;;  %v832_v12 = vadd.f32 %v831_v8, %v830_v11 }
 0x171   :  { %757 = vst.msk [vmem:[#allocation2 + $0x58] sm:$0xff] %vm746_vm1, %v720_v3  ;;  %v833_v15 = vsel %vm746_vm1, %v5558_v9, 0.0 }
 0x172   :  { %v834_v26 = vadd.f32 %v833_v15, %v832_v12 }
 0x175   :  { %v5560_v14 = vpop.f32.mrb[12].mxu0 }
 0x176   :  { %v726_v16 = vpop.f32.mrb[13].mxu0  ;;  %v5564_v18 = vld [vmem:[#allocation2 + $0x48] sm:$0xff]  ;;  %v821_v19 = vadd.f32 %v820_v5, %v5560_v14 }
 0x177   :  { %759 = vst.msk [vmem:[#allocation2 + $0x68] sm:$0xff] %vm746_vm1, %v726_v16  ;;  %v728_v20 = vpop.f32.mrb[14].mxu0  ;;  %v835_v23 = vsel %vm746_vm1, %v5564_v18, 0.0 }
 0x178   :  { %v729_v24 = vpop.f32.mrb[15].mxu0  ;;  %v5570_v25 = vld [vmem:[#allocation2 + $0x58] sm:$0xff]  ;;  %v822_v29 = vrot.slane %v821_v19, 4  ;;  %v836_v30 = vadd.f32 %v835_v23, %v834_v26 }
 0x179   :  { %v837_v31 = vsel %vm746_vm1, %v5570_v25, 0.0 }
 0x17a   :  { %v823_v32 = vadd.f32 %v822_v29, %v821_v19  ;;  %v838_v36 = vadd.f32 %v837_v31, %v836_v30 }
 0x17c   :  { %v824_v45 = vrot.slane %v823_v32, 2 }
 0x17e   :  { %v5574_v35 = vld [vmem:[#allocation2 + $0x68] sm:$0xff]  ;;  %v825_v51 = vadd.f32 %v824_v45, %v823_v32 }
 0x17f   :  { %v839_v41 = vsel %vm746_vm1, %v5574_v35, 0.0 }
 0x180   :  { %v840_v44 = vadd.f32 %v839_v41, %v838_v36  ;;  %v826_v62 = vrot.slane %v825_v51, 1 }
 0x182   :  { %v841_v48 = vrot.slane %v840_v44, 4  ;;  %v827_v5 = vadd.f32 %v826_v62, %v825_v51 }
 0x184   :  { %v842_v50 = vadd.f32 %v841_v48, %v840_v44 }
 0x186   :  { %v843_v53 = vrot.slane %v842_v50, 2 }
 0x188   :  { %v844_v57 = vadd.f32 %v843_v53, %v842_v50 }
 0x18a   :  { %v845_v1 = vrot.slane %v844_v57, 1 }
 0x18c   :  { %v846_v3 = vadd.f32 %v845_v1, %v844_v57 }
 0x18e   :  { %4054 = vmatprep.mubr.msk.f32.mxu1 %vm746_vm1, %v846_v3 }
 0x18f   :  { %915 = vmatmul.mubr.f32.vlgmr.msra.gmra.mrb[0].mxu1 %v827_v5 }
 0x190   :  { %4573 = vmatpush1.bf16.msra.mxu1 %v5343_v46  ;;  %v923_v46 = vlaneseq }
 0x191   :  { %4575 = vmatprep.subr.bf16.mxu1 %v5353_v49 }
 0x192   :  { %v5600_v49 = vshrl.u32 %v923_v46, 7 }
 0x194   :  { %4577 = vmatpush1.bf16.msra.mxu1 %v5361_v52  ;;  %v5603_v52 = vsub.s32 0, %v5600_v49 }
 0x195   :  { %4579 = vmatprep.subr.bf16.mxu1 %v5371_v55 }
 0x198   :  { %4581 = vmatpush1.bf16.msra.mxu1 %v5379_v58 }
 0x199   :  { %4583 = vmatprep.subr.bf16.mxu1 %v5389_v61 }
 0x19c   :  { %4585 = vmatpush1.bf16.msra.mxu1 %v5397_v0 }
 0x19d   :  { %4587 = vmatprep.subr.bf16.mxu1 %v5407_v4 }
 0x1a0   :  { %4589 = vmatpush1.bf16.msra.mxu1 %v5415_v7 }
 0x1a1   :  { %4591 = vmatprep.subr.bf16.mxu1 %v5425_v10 }
 0x1a4   :  { %4593 = vmatpush1.bf16.msra.mxu1 %v5433_v13 }
 0x1a5   :  { %4595 = vmatprep.subr.bf16.mxu1 %v5445_v17 }
 0x1a8   :  { %4597 = vmatpush1.bf16.msra.mxu1 %v5457_v21 }
 0x1a9   :  { %4599 = vmatprep.subr.bf16.mxu1 %v5460_v22 }
 0x1ac   :  { %4601 = vmatpush1.bf16.msra.mxu1 %v5475_v27 }
 0x1ad   :  { %4603 = vmatprep.subr.bf16.mxu1 %v5478_v28 }
 0x1b0   :  { %4605 = vmatpush1.bf16.msra.mxu1 %v5493_v33 }
 0x1b1   :  { %4607 = vmatprep.subr.bf16.mxu1 %v5496_v34 }
 0x1b4   :  { %4609 = vmatpush1.bf16.msra.mxu1 %v5505_v37 }
 0x1b5   :  { %1033 = vmatprep.subr.mxu1 %v5511_v38 }
 0x1b8   :  { %1034 = vmatpush1.msra.mxu1 %v5518_v39 }
 0x262   :  { %v916_v55 = vpop.f32.mrb[0].mxu1 }
 0x263   :  { %v921_v58 = vmul.f32 0.0006377551, %v916_v55  ;;  %v918_v61 = vpop.f32.mrb[1].mxu1 }
 0x264   :  { %v922_v0 = vmul.f32 0.0006377551, %v918_v61 }
 0x265   :  { %v926_v4 = vrot.slane %v921_v58, %v5603_v52 }
 0x266   :  { %v930_v7 = vrot.slane %v922_v0, %v5603_v52 }
 0x267   :  { %v5608_v10 = vsub.f32 %v5522_v40, %v926_v4  ;;  %v5611_v13 = vsub.f32 %v5525_v42, %v926_v4  ;;  %v5614_v17 = vsub.f32 %v5530_v47, %v926_v4  ;;  %v5617_v21 = vsub.f32 %v5534_v43, %v926_v4 }
 0x268   :  { %v5620_v22 = vsub.f32 %v5542_v59, %v930_v7  ;;  %v5623_v27 = vsub.f32 %v5538_v54, %v930_v7  ;;  %v5626_v28 = vsub.f32 %v5544_v60, %v930_v7  ;;  %v5629_v33 = vsub.f32 %v5558_v9, %v930_v7 }
 0x269   :  { %v5632_v34 = vsub.f32 %v5564_v18, %v930_v7  ;;  %v5635_v37 = vsub.f32 %v5540_v56, %v926_v4  ;;  %v5644_v42 = vsub.f32 %v5548_v63, %v926_v4  ;;  %v5647_v47 = vsub.f32 %v5570_v25, %v930_v7 }
 0x26a   :  { %v946_v38 = vmul.f32 %v5620_v22, %v5620_v22  ;;  %v948_v39 = vmul.f32 %v5623_v27, %v5623_v27  ;;  %v950_v40 = vmul.f32 %v5626_v28, %v5626_v28  ;;  %v952_v43 = vmul.f32 %v5629_v33, %v5629_v33 }
 0x26b   :  { %v5654_v59 = vsub.f32 %v5574_v35, %v930_v7  ;;  %v954_v60 = vmul.f32 %v5632_v34, %v5632_v34  ;;  %v5660_v8 = vsub.f32 %v5560_v14, %v926_v4  ;;  %v945_v9 = vmul.f32 %v5608_v10, %v5608_v10 }
 0x26c   :  { %v971_v54 = vsel %vm746_vm1, %v946_v38, 0.0  ;;  %v972_v56 = vsel %vm746_vm1, %v948_v39, 0.0  ;;  %v974_v63 = vsel %vm746_vm1, %v950_v40, 0.0  ;;  %v947_v11 = vmul.f32 %v5611_v13, %v5611_v13 }
 0x26d   :  { %v973_v6 = vadd.f32 %v972_v56, %v971_v54  ;;  %v956_v15 = vmul.f32 %v5647_v47, %v5647_v47  ;;  %v976_v16 = vsel %vm746_vm1, %v952_v43, 0.0  ;;  %v949_v18 = vmul.f32 %v5614_v17, %v5614_v17 }
 0x26e   :  { %v959_v19 = vadd.f32 %v947_v11, %v945_v9  ;;  %v958_v14 = vmul.f32 %v5654_v59, %v5654_v59  ;;  %v978_v23 = vsel %vm746_vm1, %v954_v60, 0.0  ;;  %v951_v24 = vmul.f32 %v5617_v21, %v5617_v21 }
 0x26f   :  { %v975_v12 = vadd.f32 %v974_v63, %v973_v6  ;;  %v980_v29 = vsel %vm746_vm1, %v956_v15, 0.0  ;;  %v953_v30 = vmul.f32 %v5635_v37, %v5635_v37  ;;  %v955_v36 = vmul.f32 %v5644_v42, %v5644_v42  ;;  %v1066_v15 = vld [vmem:[%s6882_s7] ss:$8 sm:$0x3] }
 0x270   :  { %v960_v25 = vadd.f32 %v959_v19, %v949_v18  ;;  %v982_v35 = vsel %vm746_vm1, %v958_v14, 0.0  ;;  %v957_v45 = vmul.f32 %v5660_v8, %v5660_v8  ;;  %v5114_v54 = vmov 1966171168   ;;  %v4056_v19 = vld [vmem:[%s6882_s7 + $0x1] ss:$8 sm:$0x3] }
 0x271   :  { %v977_v20 = vadd.f32 %v976_v16, %v975_v12  ;;  %v1075_v56 = vunpack.c.l.s4 %v5114_v54  ;;  %v5695_v18 = vsub.s32 1, %v5600_v49 }
 0x272   :  { %v961_v31 = vadd.f32 %v960_v25, %v951_v24  ;;  %v1121_v24 = vrot.slane %v4056_v19, %v5603_v52 }
 0x273   :  { %v979_v26 = vadd.f32 %v978_v23, %v977_v20  ;;  %v1076_v60 = vunpack.c.0.s8 %v1075_v56  ;;  %v1125_v25 = vrot.slane %v4056_v19, %v5695_v18  ;;  %v4844_v19 = vld [vmem:[%s6877_s2 + $0x20] ss:$0 sps:$4 sm:$0x33]  }
 0x274   :  { %v962_v41 = vadd.f32 %v961_v31, %v953_v30 }
 0x275   :  { %v981_v32 = vadd.f32 %v980_v29, %v979_v26  ;;  %v5687_v63 = vsub.s32 %v1076_v60, %v5600_v49 }
 0x276   :  { %v963_v48 = vadd.f32 %v962_v41, %v955_v36 }
 0x277   :  { %v983_v44 = vadd.f32 %v982_v35, %v981_v32 }
 0x278   :  { %v964_v51 = vadd.f32 %v963_v48, %v957_v45 }
 0x279   :  { %v984_v50 = vrot.slane %v983_v44, 4 }
 0x27a   :  { %v965_v57 = vrot.slane %v964_v51, 4 }
 0x27b   :  { %v985_v53 = vadd.f32 %v984_v50, %v983_v44 }
 0x27c   :  { %v966_v1 = vadd.f32 %v965_v57, %v964_v51 }
 0x27d   :  { %v986_v62 = vrot.slane %v985_v53, 2 }
 0x27e   :  { %v967_v5 = vrot.slane %v966_v1, 2 }
 0x27f   :  { %v987_v3 = vadd.f32 %v986_v62, %v985_v53 }
 0x280   :  { %v968_v55 = vadd.f32 %v967_v5, %v966_v1 }
 0x281   :  { %v988_v46 = vrot.slane %v987_v3, 1 }
 0x282   :  { %v969_v61 = vrot.slane %v968_v55, 1 }
 0x283   :  { %v989_v58 = vadd.f32 %v988_v46, %v987_v3 }
 0x284   :  { %v970_v0 = vadd.f32 %v969_v61, %v968_v55 }
 0x285   :  { %4055 = vmatprep.mubr.msk.f32.mxu1 %vm746_vm1, %v989_v58 }
 0x286   :  { %1058 = vmatmul.mubr.f32.vlgmr.msra.gmra.mrb[2].mxu1 %v970_v0 }
 0x287   :  { %1221 = vmatprep.mubr.bf16.mxu1 %v5113_v2 }
 0x359   :  { %v1059_v4 = vpop.f32.mrb[2].mxu1 }
 0x35a   :  { %v1064_v7 = vmul.f32 0.0006377551, %v1059_v4  ;;  %v1061_v38 = vpop.f32.mrb[3].mxu1 }
 0x35b   :  { %v1065_v39 = vmul.f32 0.0006377551, %v1061_v38 }
 0x35c   :  { %v1067_v40 = vadd.f32 1e-05, %v1064_v7 }
 0x35d   :  { %v1068_v43 = vadd.f32 1e-05, %v1065_v39 }
 0x35e   :  { %5077 = vrsqrt.f32 %v1067_v40 }
 0x35f   :  { %5079 = vrsqrt.f32 %v1068_v43 }
 0x368   :  { %v5078_v6 = vpop.eup %5077 }
 0x369   :  { %v5080_v9 = vpop.eup %5079 }
 0x36a   :  { %v1073_v11 = vcombine.low %v5078_v6, %v5080_v9 }
 0x36c   :  { %v1080_v12 = vrot.slane %v1073_v11, %v5687_v63 }
 0x36e   :  { %v1087_v16 = vrot.slane %v1080_v12, %v5687_v63  ;;  %v4841_v12 = vld [vmem:[%s6877_s2] sm:$0xff]  }
 0x370   :  { %v1089_v20 = vmul.f32 %v1087_v16, %v1066_v15  ;;  %v4842_v15 = vld [vmem:[%s6877_s2 + $0x18] sm:$0xff]   ;;  %v4843_v16 = vld [vmem:[%s6877_s2 + $0x8] ss:$0 sps:$4 sm:$0x33]  }
 0x372   :  { %v1094_v14 = vrot.slane %v1089_v20, %v5603_v52  ;;  %v1098_v23 = vrot.slane %v1089_v20, %v5695_v18  ;;  %v4852_v20 = vld [vmem:[%s6878_s3 + $0xac] ss:$8 sps:$4 sm:$0xff]  }
 0x374   :  { %v1102_v26 = vmul.f32 %v1098_v23, %v5620_v22  ;;  %v1104_v29 = vmul.f32 %v1098_v23, %v5623_v27  ;;  %v1101_v49 = vmul.f32 %v1094_v14, %v5608_v10  ;;  %v1103_v30 = vmul.f32 %v1094_v14, %v5611_v13 }
 0x375   :  { %v1106_v31 = vmul.f32 %v1098_v23, %v5626_v28  ;;  %v1108_v32 = vmul.f32 %v1098_v23, %v5629_v33  ;;  %v1105_v35 = vmul.f32 %v1094_v14, %v5614_v17  ;;  %v1107_v36 = vmul.f32 %v1094_v14, %v5617_v21 }
 0x376   :  { %v1129_v41 = vadd.f32 %v1125_v25, %v1102_v26  ;;  %v1131_v44 = vadd.f32 %v1125_v25, %v1104_v29  ;;  %v1128_v45 = vadd.f32 %v1121_v24, %v1101_v49  ;;  %v1130_v48 = vadd.f32 %v1121_v24, %v1103_v30  ;;  %v4853_v26 = vld [vmem:[%s6878_s3 + $0xb8] ss:$8 sps:$4 sm:$0xff]   ;;  %v4847_v29 = vld [vmem:[%s6877_s2 + $0x14] ss:$0 sps:$4 sm:$0x33]  }
 0x377   :  { %v1133_v50 = vadd.f32 %v1125_v25, %v1106_v31  ;;  %v1135_v22 = vadd.f32 %v1125_v25, %v1108_v32  ;;  %v1132_v51 = vadd.f32 %v1121_v24, %v1105_v35  ;;  %v1134_v27 = vadd.f32 %v1121_v24, %v1107_v36  ;;  %v4848_v49 = vld [vmem:[%s6877_s2 + $0x2c] ss:$0 sps:$4 sm:$0x33]   ;;  %v4856_v31 = vld [vmem:[%s6878_s3 + $0xc8] ss:$8 sps:$4 sm:$0xff]  }
 0x378   :  { %v1143_v53 = vmax.f32 %v1129_v41, 0.0  ;;  %v1145_v10 = vmax.f32 %v1131_v44, 0.0  ;;  %v1142_v57 = vmax.f32 %v1128_v45, 0.0  ;;  %v1144_v13 = vmax.f32 %v1130_v48, 0.0  ;;  %v4858_v30 = vld [vmem:[%s6878_s3 + $0xcc] ss:$8 sps:$4 sm:$0xff]  }
 0x379   :  { %v1147_v62 = vmax.f32 %v1133_v50, 0.0  ;;  %v1149_v28 = vmax.f32 %v1135_v22, 0.0  ;;  %v1146_v1 = vmax.f32 %v1132_v51, 0.0  ;;  %v1110_v21 = vmul.f32 %v1098_v23, %v5632_v34  ;;  %v4862_v32 = vld [vmem:[%s6878_s3 + $0xdc] ss:$8 sps:$4 sm:$0xff]   ;;  %v4849_v36 = vld [vmem:[%s6877_s2 + $0x30] sm:$0xff]  }
 0x37a   :  { %v5712_v33 = vpack.c.bf16 %v1145_v10, %v1143_v53  ;;  %v5714_v17 = vpack.c.bf16 %v1144_v13, %v1142_v57  ;;  %v1112_v3 = vmul.f32 %v1098_v23, %v5647_v47  ;;  %v1148_v46 = vmax.f32 %v1134_v27, 0.0  ;;  %v4860_v35 = vld [vmem:[%s6878_s3 + $0xd8] ss:$8 sps:$4 sm:$0xff]   ;;  %v4865_v41 = vld [vmem:[%s6878_s3 + $0xec] ss:$8 sps:$4 sm:$0xff]  }
 0x37b   :  { %v5718_v5 = vpack.c.bf16 %v1149_v28, %v1147_v62  ;;  %v1109_v55 = vmul.f32 %v1094_v14, %v5635_v37  ;;  %v1111_v58 = vmul.f32 %v1094_v14, %v5644_v42  ;;  %v1137_v61 = vadd.f32 %v1125_v25, %v1110_v21  ;;  %v4863_v44 = vld [vmem:[%s6878_s3 + $0xe8] ss:$8 sps:$4 sm:$0xff]   ;;  %v4868_v45 = vld [vmem:[%s6878_s3 + $0xfc] ss:$8 sps:$4 sm:$0xff]   ;;  %v4866_v48 = vld [vmem:[%s6878_s3 + $0xf8] ss:$8 sps:$4 sm:$0xff]  }
 0x37c   :  { %1189 = vmatprep.subr.bf16.mxu1 %v5712_v33  ;;  %1714 = vmatprep.subr.bf16.mxu0 %v5712_v33  ;;  %v1139_v0 = vadd.f32 %v1125_v25, %v1112_v3  ;;  %v1114_v4 = vmul.f32 %v1098_v23, %v5654_v59  ;;  %v1113_v7 = vmul.f32 %v1094_v14, %v5660_v8  ;;  %v4845_v14 = vld [vmem:[%s6877_s2 + $0xc] sm:$0xff]   ;;  %v4846_v23 = vld [vmem:[%s6877_s2 + $0x24] sm:$0xff]   ;;  %v4859_v50 = vld [vmem:[%s6877_s2 + $0x38] ss:$0 sps:$4 sm:$0x33]  }
 0x37d   :  { %1190 = vmatpush1.bf16.msra.mxu1 %v5714_v17  ;;  %1715 = vmatpush1.bf16.msra.mxu0 %v5714_v17  ;;  %v1136_v34 = vadd.f32 %v1121_v24, %v1109_v55  ;;  %v1138_v47 = vadd.f32 %v1121_v24, %v1111_v58  ;;  %v1151_v37 = vmax.f32 %v1137_v61, 0.0  ;;  %v5730_v39 = vpack.c.bf16 %v1148_v46, %v1146_v1  ;;  %v4869_v22 = vld [vmem:[%s6878_s3 + $0x108] ss:$8 sps:$4 sm:$0xff]   ;;  %v4871_v51 = vld [vmem:[%s6878_s3 + $0x10c] ss:$8 sps:$4 sm:$0xff]  }
 0x37e   :  { %1191 = vmatprep.subr.bf16.mxu1 %v5718_v5  ;;  %1716 = vmatprep.subr.bf16.mxu0 %v5718_v5  ;;  %v1153_v42 = vmax.f32 %v1139_v0, 0.0  ;;  %v1141_v38 = vadd.f32 %v1125_v25, %v1114_v4  ;;  %v1140_v59 = vadd.f32 %v1121_v24, %v1113_v7  ;;  %v4850_v24 = vld [vmem:[%s6878_s3 + $0xa8] ss:$8 sps:$4 sm:$0xff]   ;;  %v4855_v25 = vld [vmem:[%s6878_s3 + $0xbc] ss:$8 sps:$4 sm:$0xff]  }
 0x37f   :  { %v1150_v40 = vmax.f32 %v1136_v34, 0.0  ;;  %v1152_v43 = vmax.f32 %v1138_v47, 0.0  ;;  %v4874_v27 = vld [vmem:[%s6878_s3 + $0x11c] ss:$8 sps:$4 sm:$0xff]   ;;  %v4872_v53 = vld [vmem:[%s6878_s3 + $0x118] ss:$8 sps:$4 sm:$0xff]  }
 0x380   :  { %v5732_v54 = vpack.c.bf16 %v1153_v42, %v1151_v37  ;;  %v1155_v56 = vmax.f32 %v1141_v38, 0.0  ;;  %v1154_v8 = vmax.f32 %v1140_v59, 0.0  ;;  %v4875_v10 = vld [vmem:[%s6878_s3 + $0x128] ss:$8 sps:$4 sm:$0xff]   ;;  %v4877_v57 = vld [vmem:[%s6878_s3 + $0x12c] ss:$8 sps:$4 sm:$0xff]  }
 0x381   :  { %1192 = vmatpush1.bf16.msra.mxu1 %v5730_v39  ;;  %1717 = vmatpush1.bf16.msra.mxu0 %v5730_v39  ;;  %v5738_v60 = vpack.c.bf16 %v1152_v43, %v1150_v40  ;;  %v4880_v13 = vld [vmem:[%s6878_s3 + $0x13c] ss:$8 sps:$4 sm:$0xff]   ;;  %v4878_v62 = vld [vmem:[%s6878_s3 + $0x138] ss:$8 sps:$4 sm:$0xff]   ;;  %v4090_v28 = vld [vmem:[%s6878_s3 + $0x148] sm:$0xff] }
 0x382   :  { %1193 = vmatprep.subr.bf16.mxu1 %v5732_v54  ;;  %1718 = vmatprep.subr.bf16.mxu0 %v5732_v54  ;;  %v5740_v6 = vpack.c.bf16 %v1155_v56, %v1155_v56  ;;  %v1162_v9 = vpack.c.bf16 %v1154_v8, %v1154_v8  ;;  %v4112_v1 = vcombine.high %v4090_v28, %v4090_v28  ;;  %v4885_v21 = vld [vmem:[%s6878_s3 + $0x4] ss:$8 sps:$4 sm:$0xff]  }
 0x384   :  { %v5749_v11 = vsel %vm1182_vm2, %v1162_v9, 0 }
 0x385   :  { %1194 = vmatpush1.bf16.msra.mxu1 %v5738_v60  ;;  %1719 = vmatpush1.bf16.msra.mxu0 %v5738_v60 }
 0x386   :  { %4059 = vmatprep.subr.msk.bf16.mxu1 %vm1182_vm2, %v5740_v6  ;;  %4146 = vmatprep.subr.msk.bf16.mxu0 %vm1182_vm2, %v5740_v6 }
 0x389   :  { %1196 = vmatpush1.bf16.msra.mxu1 %v5749_v11  ;;  %1721 = vmatpush1.bf16.msra.mxu0 %v5749_v11 }
 0x38a   :  { %1283 = vmatprep.subr.bf16.mxu1 %v5712_v33  ;;  %1983 = vmatprep.subr.bf16.mxu0 %v5712_v33 }
 0x38c   :  { %4060 = vmatmul.mubr.msk.bf16.vlgmr.msra.gmra.mrb[4].mxu1 %vm1175_vm3, %v4841_v12  ;;  %4147 = vmatmul.mubr.msk.bf16.vlgmr.msra.gmra.mrb[16].mxu0 %vm1175_vm3, %v4842_v15 }
 0x38d   :  { %1284 = vmatpush1.bf16.msra.mxu1 %v5714_v17  ;;  %1984 = vmatpush1.bf16.msra.mxu0 %v5714_v17 }
 0x38e   :  { %1285 = vmatprep.subr.bf16.mxu1 %v5718_v5  ;;  %1985 = vmatprep.subr.bf16.mxu0 %v5718_v5 }
 0x38f   :  { %1231 = vmatprep.mubr.bf16.mxu1 %v5113_v2  ;;  %1756 = vmatprep.mubr.bf16.mxu0 %v5113_v2 }
 0x391   :  { %1286 = vmatpush1.bf16.msra.mxu1 %v5730_v39  ;;  %1986 = vmatpush1.bf16.msra.mxu0 %v5730_v39 }
 0x392   :  { %1287 = vmatprep.subr.bf16.mxu1 %v5732_v54  ;;  %1987 = vmatprep.subr.bf16.mxu0 %v5732_v54 }
 0x394   :  { %4061 = vmatmul.mubr.msk.bf16.gmra.mrb[8].mxu1 %vm1175_vm3, %v4843_v16  ;;  %4148 = vmatmul.mubr.msk.bf16.gmra.mrb[20].mxu0 %vm1175_vm3, %v4844_v19 }
 0x395   :  { %1288 = vmatpush1.bf16.msra.mxu1 %v5738_v60  ;;  %1988 = vmatpush1.bf16.msra.mxu0 %v5738_v60 }
 0x396   :  { %4067 = vmatprep.subr.msk.bf16.mxu1 %vm1182_vm2, %v5740_v6  ;;  %4200 = vmatprep.subr.msk.bf16.mxu0 %vm1182_vm2, %v5740_v6 }
 0x397   :  { %1315 = vmatprep.mubr.bf16.mxu1 %v5113_v2  ;;  %2015 = vmatprep.mubr.bf16.mxu0 %v5113_v2 }
 0x399   :  { %1290 = vmatpush1.bf16.msra.mxu1 %v5749_v11  ;;  %1990 = vmatpush1.bf16.msra.mxu0 %v5749_v11 }
 0x39a   :  { %2252 = vmatprep.subr.bf16.mxu0 %v5712_v33  ;;  %1477 = vmatprep.subr.bf16.mxu1 %v4852_v20  ;;  %v4111_v33 = vcombine.low %v4090_v28, %v4090_v28 }
 0x39c   :  { %4068 = vmatmul.mubr.msk.bf16.vlgmr.msra.gmra.mrb[12].mxu1 %vm1175_vm3, %v4845_v14  ;;  %4201 = vmatmul.mubr.msk.bf16.vlgmr.msra.gmra.mrb[24].mxu0 %vm1175_vm3, %v4846_v23  ;;  %v4883_v14 = vld [vmem:[%s6878_s3] ss:$8 sps:$4 sm:$0xff]  }
 0x39d   :  { %2253 = vmatpush1.bf16.msra.mxu0 %v5714_v17  ;;  %1325 = vmatprep.mubr.bf16.mxu1 %v5113_v2  ;;  %v1472_v17 = vsel %vm1182_vm2, %v4111_v33, 0 }
 0x39e   :  { %2254 = vmatprep.subr.bf16.mxu0 %v5718_v5  ;;  %2025 = vmatprep.mubr.bf16.mxu0 %v5113_v2 }
 0x39f   :  { %1478 = vmatpush1.bf16.msra.mxu1 %v4850_v24  ;;  %v4888_v24 = vld [vmem:[%s6878_s3 + $0x14] ss:$8 sps:$4 sm:$0xff]  }
 0x3a0   :  { %1479 = vmatprep.subr.bf16.mxu1 %v4855_v25 }
 0x3a1   :  { %2255 = vmatpush1.bf16.msra.mxu0 %v5730_v39 }
 0x3a2   :  { %2256 = vmatprep.subr.bf16.mxu0 %v5732_v54 }
 0x3a3   :  { %1480 = vmatpush1.bf16.msra.mxu1 %v4853_v26 }
 0x3a4   :  { %4069 = vmatmul.mubr.msk.bf16.gmra.mrb[16].mxu1 %vm1175_vm3, %v4847_v29  ;;  %4202 = vmatmul.mubr.msk.bf16.gmra.mrb[28].mxu0 %vm1175_vm3, %v4848_v49  ;;  %v4886_v29 = vld [vmem:[%s6878_s3 + $0x10] ss:$8 sps:$4 sm:$0xff]  }
 0x3a5   :  { %2257 = vmatpush1.bf16.msra.mxu0 %v5738_v60  ;;  %2284 = vmatprep.mubr.bf16.mxu0 %v5113_v2 }
 0x3a6   :  { %4254 = vmatprep.subr.msk.bf16.mxu0 %vm1182_vm2, %v5740_v6  ;;  %1481 = vmatprep.subr.bf16.mxu1 %v4858_v30  ;;  %v4891_v30 = vld [vmem:[%s6878_s3 + $0x24] ss:$8 sps:$4 sm:$0xff]  }
 0x3a7   :  { %1482 = vmatpush1.bf16.msra.mxu1 %v4856_v31 }
 0x3a8   :  { %1483 = vmatprep.subr.bf16.mxu1 %v4862_v32 }
 0x3a9   :  { %2259 = vmatpush1.bf16.msra.mxu0 %v5749_v11 }
 0x3ab   :  { %1484 = vmatpush1.bf16.msra.mxu1 %v4860_v35 }
 0x3ac   :  { %4255 = vmatmul.mubr.msk.bf16.vlgmr.msra.gmra.mrb[32].mxu0 %vm1175_vm3, %v4849_v36  ;;  %1485 = vmatprep.subr.bf16.mxu1 %v4865_v41  ;;  %v4889_v41 = vld [vmem:[%s6878_s3 + $0x20] ss:$8 sps:$4 sm:$0xff]  }
 0x3ad   :  { %2294 = vmatprep.mubr.bf16.mxu0 %v5113_v2 }
 0x3af   :  { %1486 = vmatpush1.bf16.msra.mxu1 %v4863_v44  ;;  %v4894_v44 = vld [vmem:[%s6878_s3 + $0x34] ss:$8 sps:$4 sm:$0xff]  }
 0x3b0   :  { %1487 = vmatprep.subr.bf16.mxu1 %v4868_v45  ;;  %v4892_v45 = vld [vmem:[%s6878_s3 + $0x30] ss:$8 sps:$4 sm:$0xff]  }
 0x3b3   :  { %1488 = vmatpush1.bf16.msra.mxu1 %v4866_v48  ;;  %v4897_v48 = vld [vmem:[%s6878_s3 + $0x44] ss:$8 sps:$4 sm:$0xff]  }
 0x3b4   :  { %4256 = vmatmul.mubr.msk.bf16.gmra.mrb[36].mxu0 %vm1175_vm3, %v4859_v50  ;;  %1489 = vmatprep.subr.bf16.mxu1 %v4871_v51  ;;  %v4895_v50 = vld [vmem:[%s6878_s3 + $0x40] ss:$8 sps:$4 sm:$0xff]   ;;  %v4898_v51 = vld [vmem:[%s6878_s3 + $0x50] ss:$8 sps:$4 sm:$0xff]  }
 0x3b7   :  { %1490 = vmatpush1.bf16.msra.mxu1 %v4869_v22  ;;  %v4900_v22 = vld [vmem:[%s6878_s3 + $0x54] ss:$8 sps:$4 sm:$0xff]  }
 0x3b8   :  { %1491 = vmatprep.subr.bf16.mxu1 %v4874_v27  ;;  %v4903_v27 = vld [vmem:[%s6878_s3 + $0x64] ss:$8 sps:$4 sm:$0xff]  }
 0x3bb   :  { %1492 = vmatpush1.bf16.msra.mxu1 %v4872_v53  ;;  %v4901_v53 = vld [vmem:[%s6878_s3 + $0x60] ss:$8 sps:$4 sm:$0xff]  }
 0x3bc   :  { %1493 = vmatprep.subr.bf16.mxu1 %v4877_v57  ;;  %v4904_v57 = vld [vmem:[%s6878_s3 + $0x70] ss:$8 sps:$4 sm:$0xff]  }
 0x3bf   :  { %1494 = vmatpush1.bf16.msra.mxu1 %v4875_v10  ;;  %v4906_v10 = vld [vmem:[%s6878_s3 + $0x74] ss:$8 sps:$4 sm:$0xff]  }
 0x3c0   :  { %1495 = vmatprep.subr.bf16.mxu1 %v4880_v13  ;;  %v4909_v13 = vld [vmem:[%s6878_s3 + $0x84] ss:$8 sps:$4 sm:$0xff]  }
 0x3c3   :  { %1496 = vmatpush1.bf16.msra.mxu1 %v4878_v62  ;;  %v4907_v62 = vld [vmem:[%s6878_s3 + $0x80] ss:$8 sps:$4 sm:$0xff]  }
 0x3c4   :  { %4113 = vmatprep.subr.msk.bf16.mxu1 %vm1182_vm2, %v4112_v1  ;;  %v4912_v1 = vld [vmem:[%s6878_s3 + $0x94] ss:$8 sps:$4 sm:$0xff]  }
 0x3c7   :  { %1498 = vmatpush1.bf16.msra.mxu1 %v1472_v17  ;;  %v1264_v17 = vld [vmem:[%s6878_s3 + $0xa0] sm:$0xff] }
 0x3c8   :  { %1645 = vmatprep.subr.bf16.mxu1 %v4885_v21 }
 0x45f   :  { %v5896_v3 = vpop.f32.mrb[4].mxu1  ;;  %v5898_v5 = vpop.f32.mrb[16].mxu0 }
 0x460   :  { %v1225_v46 = vpop.f32.mrb[5].mxu1  ;;  %v5900_v55 = vpop.f32.mrb[17].mxu0 }
 0x461   :  { %v5902_v58 = vpop.f32.mrb[6].mxu1  ;;  %v5904_v61 = vpop.f32.mrb[18].mxu0 }
 0x462   :  { %v1240_v0 = vpack.c.bf16 %v5902_v58, %v5896_v3  ;;  %v1229_v4 = vpop.f32.mrb[7].mxu1  ;;  %v1765_v34 = vpack.c.bf16 %v5904_v61, %v5898_v5  ;;  %v5910_v47 = vpop.f32.mrb[19].mxu0  ;;  %v4921_v3 = vld [vmem:[%s6878_s3 + $0x170] ss:$8 sps:$4 sm:$0xff]   ;;  %v4958_v61 = vld [vmem:[%s6878_s3 + $0x22c] ss:$8 sps:$4 sm:$0xff]  }
 0x463   :  { %v1241_v7 = vpack.c.bf16 %v1229_v4, %v1225_v46  ;;  %v1766_v37 = vpack.c.bf16 %v5910_v47, %v5900_v55  ;;  %v4910_v4 = vld [vmem:[%s6878_s3 + $0x90] ss:$8 sps:$4 sm:$0xff]  }
 0x464   :  { %v2510_v55 = vld [vmem:[%s6881_s6 + $0x150] sm:$0xff]  ;;  %v4953_v5 = vld [vmem:[%s6878_s3 + $0x218] ss:$8 sps:$4 sm:$0xff]  }
 0x467   :  { %v5914_v42 = vpop.f32.mrb[8].mxu1  ;;  %v5916_v38 = vpop.f32.mrb[20].mxu0 }
 0x468   :  { %v5918_v39 = vpop.f32.mrb[9].mxu1  ;;  %v5920_v40 = vpop.f32.mrb[21].mxu0 }
 0x469   :  { %v1237_v43 = vpop.f32.mrb[10].mxu1  ;;  %v1762_v59 = vpop.f32.mrb[22].mxu0 }
 0x46a   :  { %v1238_v54 = vpop.f32.mrb[11].mxu1  ;;  %v1763_v56 = vpop.f32.mrb[23].mxu0  ;;  %v4136_v43 = vcombine.low %v1264_v17, %v1264_v17 }
 0x46b   :  { %v4917_v56 = vld [vmem:[%s6878_s3 + $0x154] ss:$8 sps:$4 sm:$0xff]  }
 0x46c   :  { %v1640_v54 = vsel %vm1182_vm2, %v4136_v43, 0 }
 0x46f   :  { %v1317_v8 = vpop.f32.mrb[12].mxu1  ;;  %v5922_v60 = vpop.f32.mrb[24].mxu0 }
 0x470   :  { %v1319_v6 = vpop.f32.mrb[13].mxu1  ;;  %v5924_v9 = vpop.f32.mrb[25].mxu0 }
 0x471   :  { %v1321_v11 = vpop.f32.mrb[14].mxu1  ;;  %v5926_v12 = vpop.f32.mrb[26].mxu0 }
 0x472   :  { %v1334_v15 = vpack.c.bf16 %v1321_v11, %v1317_v8  ;;  %v1323_v16 = vpop.f32.mrb[15].mxu1  ;;  %v2034_v19 = vpack.c.bf16 %v5926_v12, %v5922_v60  ;;  %v5933_v23 = vpop.f32.mrb[27].mxu0  ;;  %v4985_v60 = vld [vmem:[%s6878_s3 + $0x2c0] ss:$8 sps:$4 sm:$0xff]   ;;  %v4990_v12 = vld [vmem:[%s6878_s3 + $0x2d4] ss:$8 sps:$4 sm:$0xff]  }
 0x473   :  { %v1335_v20 = vpack.c.bf16 %v1323_v16, %v1319_v6  ;;  %v2035_v25 = vpack.c.bf16 %v5933_v23, %v5924_v9  ;;  %v4915_v16 = vld [vmem:[%s6878_s3 + $0x150] ss:$8 sps:$4 sm:$0xff]   ;;  %v4967_v23 = vld [vmem:[%s6878_s3 + $0x25c] ss:$8 sps:$4 sm:$0xff]  }
 0x474   :  { %v4962_v9 = vld [vmem:[%s6878_s3 + $0x248] ss:$8 sps:$4 sm:$0xff]  }
 0x475   :  { %4114 = vmatprep.mubr.msk.bf16.mxu1 %vm746_vm1, %v1335_v20 }
 0x476   :  { %1510 = vmatmul.mubr.bf16.vlgmr.msra.gmra.mrb[20].mxu1 %v1334_v15 }
 0x477   :  { %1646 = vmatpush1.bf16.msra.mxu1 %v4883_v14  ;;  %v1327_v26 = vpop.f32.mrb[16].mxu1  ;;  %v5988_v28 = vpop.f32.mrb[28].mxu0  ;;  %v4920_v14 = vld [vmem:[%s6878_s3 + $0x164] ss:$8 sps:$4 sm:$0xff]  }
 0x478   :  { %1647 = vmatprep.subr.bf16.mxu1 %v4888_v24  ;;  %v1329_v49 = vpop.f32.mrb[17].mxu1  ;;  %v1336_v35 = vpack.c.bf16 %v1327_v26, %v1327_v26  ;;  %v5993_v33 = vpop.f32.mrb[29].mxu0  ;;  %v1243_v24 = vpack.c.bf16 %v5918_v39, %v5918_v39  ;;  %v4918_v26 = vld [vmem:[%s6878_s3 + $0x160] ss:$8 sps:$4 sm:$0xff]   ;;  %v4926_v39 = vld [vmem:[%s6878_s3 + $0x184] ss:$8 sps:$4 sm:$0xff]  }
 0x479   :  { %v1337_v31 = vpack.c.bf16 %v1329_v49, %v1329_v49  ;;  %v1331_v32 = vpop.f32.mrb[18].mxu1  ;;  %v2031_v21 = vpop.f32.mrb[30].mxu0  ;;  %v4923_v49 = vld [vmem:[%s6878_s3 + $0x174] ss:$8 sps:$4 sm:$0xff]  }
 0x47a   :  { %v1332_v36 = vpop.f32.mrb[19].mxu1  ;;  %v2032_v46 = vpop.f32.mrb[31].mxu0  ;;  %v4924_v32 = vld [vmem:[%s6878_s3 + $0x180] ss:$8 sps:$4 sm:$0xff]   ;;  %v4939_v21 = vld [vmem:[%s6878_s3 + $0x1d0] ss:$8 sps:$4 sm:$0xff]  }
 0x47b   :  { %1648 = vmatpush1.bf16.msra.mxu1 %v4886_v29  ;;  %4115 = vmatprep.mubr.msk.bf16.mxu1 %vm746_vm1, %v1337_v31  ;;  %v2511_v36 = vld [vmem:[%s6881_s6 + $0x158] sm:$0xff]  ;;  %v4944_v46 = vld [vmem:[%s6878_s3 + $0x1e4] ss:$8 sps:$4 sm:$0xff]  }
 0x47c   :  { %1649 = vmatprep.subr.bf16.mxu1 %v4891_v30 }
 0x47e   :  { %1520 = vmatmul.mubr.bf16.gmra.mrb[24].mxu1 %v1336_v35  ;;  %v4927_v35 = vld [vmem:[%s6878_s3 + $0x190] ss:$8 sps:$4 sm:$0xff]  }
 0x47f   :  { %1650 = vmatpush1.bf16.msra.mxu1 %v4889_v41  ;;  %4139 = vmatprep.mubr.msk.bf16.mxu1 %vm746_vm1, %v1241_v7  ;;  %v4137_v7 = vcombine.high %v1264_v17, %v1264_v17  ;;  %v6001_v59 = vpop.f32.mrb[32].mxu0  ;;  %v2513_v41 = vld [vmem:[%s6881_s6 + $0x168] sm:$0xff]  ;;  %v4941_v17 = vld [vmem:[%s6878_s3 + $0x1d4] ss:$8 sps:$4 sm:$0xff]  }
 0x480   :  { %1651 = vmatprep.subr.bf16.mxu1 %v4894_v44  ;;  %v6008_v8 = vpop.f32.mrb[33].mxu0  ;;  %v6070_v47 = vpack.c.bf16 %v2513_v41, %v2511_v36  ;;  %v2515_v44 = vld [vmem:[%s6881_s6 + $0x178] sm:$0xff]  ;;  %v4974_v41 = vld [vmem:[%s6878_s3 + $0x288] ss:$8 sps:$4 sm:$0xff]  }
 0x481   :  { %v6010_v6 = vpop.f32.mrb[34].mxu0  ;;  %v4223_v36 = vld [vmem:[%s6878_s3 + $0x298] sm:$0xff] }
 0x482   :  { %v2303_v11 = vpack.c.bf16 %v6010_v6, %v6001_v59  ;;  %v6014_v15 = vpop.f32.mrb[35].mxu0  ;;  %4611 = vmatprep.subr.bf16.mxu0 %v6070_v47  ;;  %v2518_v59 = vld [vmem:[%s6881_s6 + $0x190] sm:$0xff]  ;;  %v2520_v6 = vld [vmem:[%s6881_s6 + $0x1a0] sm:$0xff] }
 0x483   :  { %1652 = vmatpush1.bf16.msra.mxu1 %v4892_v45  ;;  %v2304_v20 = vpack.c.bf16 %v6014_v15, %v6008_v8  ;;  %v2517_v45 = vld [vmem:[%s6881_s6 + $0x188] sm:$0xff]  ;;  %v4994_v8 = vld [vmem:[%s6878_s3 + $0x2f0] ss:$8 sps:$4 sm:$0xff]  }
 0x484   :  { %1653 = vmatprep.subr.bf16.mxu1 %v4897_v48  ;;  %v4932_v48 = vld [vmem:[%s6878_s3 + $0x1a4] ss:$8 sps:$4 sm:$0xff]  }
 0x485   :  { %v4999_v15 = vld [vmem:[%s6878_s3 + $0x304] ss:$8 sps:$4 sm:$0xff]  }
 0x487   :  { %1654 = vmatpush1.bf16.msra.mxu1 %v4895_v50  ;;  %v6033_v29 = vpop.f32.mrb[36].mxu0 }
 0x488   :  { %1655 = vmatprep.subr.bf16.mxu1 %v4900_v22  ;;  %v6038_v30 = vpop.f32.mrb[37].mxu0  ;;  %v6086_v22 = vpack.c.bf16 %v2517_v45, %v2515_v44  ;;  %v4981_v45 = vld [vmem:[%s6878_s3 + $0x2a4] ss:$8 sps:$4 sm:$0xff]  }
 0x489   :  { %v2300_v58 = vpop.f32.mrb[38].mxu0 }
 0x48a   :  { %v2301_v31 = vpop.f32.mrb[39].mxu0  ;;  %v4959_v58 = vld [vmem:[%s6878_s3 + $0x238] ss:$8 sps:$4 sm:$0xff]  }
 0x48b   :  { %1656 = vmatpush1.bf16.msra.mxu1 %v4898_v51  ;;  %v2514_v51 = vld [vmem:[%s6881_s6 + $0x170] sm:$0xff] }
 0x48c   :  { %1657 = vmatprep.subr.bf16.mxu1 %v4903_v27  ;;  %v2516_v27 = vld [vmem:[%s6881_s6 + $0x180] sm:$0xff]  ;;  %v4968_v31 = vld [vmem:[%s6878_s3 + $0x268] ss:$8 sps:$4 sm:$0xff]  }
 0x48f   :  { %1658 = vmatpush1.bf16.msra.mxu1 %v4901_v53  ;;  %v6096_v53 = vpack.c.bf16 %v2516_v27, %v2514_v51  ;;  %v2037_v51 = vpack.c.bf16 %v5993_v33, %v5993_v33  ;;  %v4984_v27 = vld [vmem:[%s6878_s3 + $0x2b4] ss:$8 sps:$4 sm:$0xff]   ;;  %v4987_v33 = vld [vmem:[%s6878_s3 + $0x2c4] ss:$8 sps:$4 sm:$0xff]  }
 0x490   :  { %1659 = vmatprep.subr.bf16.mxu1 %v4906_v10  ;;  %v4930_v10 = vld [vmem:[%s6878_s3 + $0x1a0] ss:$8 sps:$4 sm:$0xff]  }
 0x493   :  { %1660 = vmatpush1.bf16.msra.mxu1 %v4904_v57  ;;  %v4935_v57 = vld [vmem:[%s6878_s3 + $0x1b4] ss:$8 sps:$4 sm:$0xff]  }
 0x494   :  { %1661 = vmatprep.subr.bf16.mxu1 %v4909_v13  ;;  %v4933_v13 = vld [vmem:[%s6878_s3 + $0x1b0] ss:$8 sps:$4 sm:$0xff]  }
 0x497   :  { %1662 = vmatpush1.bf16.msra.mxu1 %v4907_v62  ;;  %v4938_v62 = vld [vmem:[%s6878_s3 + $0x1c4] ss:$8 sps:$4 sm:$0xff]  }
 0x498   :  { %1663 = vmatprep.subr.bf16.mxu1 %v4912_v1  ;;  %v4936_v1 = vld [vmem:[%s6878_s3 + $0x1c0] ss:$8 sps:$4 sm:$0xff]  }
 0x49b   :  { %1664 = vmatpush1.bf16.msra.mxu1 %v4910_v4  ;;  %v4169_v4 = vld [vmem:[%s6878_s3 + $0x1f0] sm:$0xff] }
 0x49c   :  { %4138 = vmatprep.subr.msk.bf16.mxu1 %vm1182_vm2, %v4137_v7  ;;  %v4942_v7 = vld [vmem:[%s6878_s3 + $0x1e0] ss:$8 sps:$4 sm:$0xff]   ;;  %v4191_v43 = vcombine.high %v4169_v4, %v4169_v4 }
 0x49f   :  { %1666 = vmatpush1.bf16.msra.mxu1 %v1640_v54  ;;  %v4190_v54 = vcombine.low %v4169_v4, %v4169_v4  ;;  %v5008_v4 = vld [vmem:[%s6878_s3 + $0x334] ss:$8 sps:$4 sm:$0xff]  }
 0x4a0   :  { %1908 = vmatprep.subr.bf16.mxu1 %v4917_v56 }
 0x4a1   :  { %v1903_v56 = vsel %vm1182_vm2, %v4190_v54, 0 }
 0x4a2   :  { %1678 = vmatmul.mubr.bf16.vlgmr.msra.gmra.mrb[20].mxu1 %v1240_v0  ;;  %v1242_v0 = vpack.c.bf16 %v5914_v42, %v5914_v42  ;;  %v4929_v42 = vld [vmem:[%s6878_s3 + $0x194] ss:$8 sps:$4 sm:$0xff]  }
 0x4a3   :  { %4140 = vmatprep.mubr.msk.bf16.mxu1 %vm746_vm1, %v1243_v24  ;;  %1909 = vmatpush1.bf16.msra.mxu1 %v4915_v16  ;;  %v4949_v16 = vld [vmem:[%s6878_s3 + $0x1fc] ss:$8 sps:$4 sm:$0xff]   ;;  %v1768_v24 = vpack.c.bf16 %v5920_v40, %v5920_v40 }
 0x4a4   :  { %1910 = vmatprep.subr.bf16.mxu1 %v4920_v14  ;;  %v4947_v14 = vld [vmem:[%s6878_s3 + $0x1f8] ss:$8 sps:$4 sm:$0xff]   ;;  %v4955_v40 = vld [vmem:[%s6878_s3 + $0x21c] ss:$8 sps:$4 sm:$0xff]  }
 0x4a7   :  { %1911 = vmatpush1.bf16.msra.mxu1 %v4918_v26  ;;  %v4952_v26 = vld [vmem:[%s6878_s3 + $0x20c] ss:$8 sps:$4 sm:$0xff]  }
 0x4a8   :  { %1912 = vmatprep.subr.bf16.mxu1 %v4923_v49  ;;  %v4950_v49 = vld [vmem:[%s6878_s3 + $0x208] ss:$8 sps:$4 sm:$0xff]  }
 0x4aa   :  { %1688 = vmatmul.mubr.bf16.gmra.mrb[24].mxu1 %v1242_v0  ;;  %v4964_v0 = vld [vmem:[%s6878_s3 + $0x24c] ss:$8 sps:$4 sm:$0xff]  }
 0x4ab   :  { %1913 = vmatpush1.bf16.msra.mxu1 %v4921_v3  ;;  %4193 = vmatprep.mubr.msk.bf16.mxu1 %vm746_vm1, %v1766_v37  ;;  %v2512_v37 = vld [vmem:[%s6881_s6 + $0x160] sm:$0xff]  ;;  %v1767_v3 = vpack.c.bf16 %v5916_v38, %v5916_v38 }
 0x4ac   :  { %1914 = vmatprep.subr.bf16.mxu1 %v4926_v39  ;;  %v6084_v50 = vpack.c.bf16 %v2512_v37, %v2510_v55  ;;  %v4961_v38 = vld [vmem:[%s6878_s3 + $0x23c] ss:$8 sps:$4 sm:$0xff]   ;;  %v4970_v39 = vld [vmem:[%s6878_s3 + $0x26c] ss:$8 sps:$4 sm:$0xff]   ;;  %v4245_v55 = vcombine.high %v4223_v36, %v4223_v36  ;;  %v4244_v37 = vcombine.low %v4223_v36, %v4223_v36 }
 0x4ae   :  { %4613 = vmatpush1.bf16.msra.mxu0 %v6084_v50  ;;  %v2172_v44 = vsel %vm1182_vm2, %v4244_v37, 0 }
 0x4af   :  { %1915 = vmatpush1.bf16.msra.mxu1 %v4924_v32  ;;  %4615 = vmatprep.subr.bf16.mxu0 %v6086_v22  ;;  %v4973_v32 = vld [vmem:[%s6878_s3 + $0x27c] ss:$8 sps:$4 sm:$0xff]  }
 0x4b0   :  { %1916 = vmatprep.subr.bf16.mxu1 %v4929_v42  ;;  %v4971_v42 = vld [vmem:[%s6878_s3 + $0x278] ss:$8 sps:$4 sm:$0xff]  }
 0x4b2   :  { %4617 = vmatpush1.bf16.msra.mxu0 %v6096_v53 }
 0x4b3   :  { %1917 = vmatpush1.bf16.msra.mxu1 %v4927_v35  ;;  %v4976_v35 = vld [vmem:[%s6878_s3 + $0x28c] ss:$8 sps:$4 sm:$0xff]  }
 0x4b4   :  { %1918 = vmatprep.subr.bf16.mxu1 %v4932_v48  ;;  %v4979_v48 = vld [vmem:[%s6878_s3 + $0x2a0] ss:$8 sps:$4 sm:$0xff]  }
 0x4b7   :  { %1919 = vmatpush1.bf16.msra.mxu1 %v4930_v10  ;;  %v4982_v10 = vld [vmem:[%s6878_s3 + $0x2b0] ss:$8 sps:$4 sm:$0xff]  }
 0x4b8   :  { %1920 = vmatprep.subr.bf16.mxu1 %v4935_v57  ;;  %v2036_v57 = vpack.c.bf16 %v5988_v28, %v5988_v28  ;;  %v4993_v28 = vld [vmem:[%s6878_s3 + $0x2e4] ss:$8 sps:$4 sm:$0xff]  }
 0x4bb   :  { %1921 = vmatpush1.bf16.msra.mxu1 %v4933_v13  ;;  %v4991_v13 = vld [vmem:[%s6878_s3 + $0x2e0] ss:$8 sps:$4 sm:$0xff]  }
 0x4bc   :  { %1922 = vmatprep.subr.bf16.mxu1 %v4938_v62  ;;  %v4996_v62 = vld [vmem:[%s6878_s3 + $0x2f4] ss:$8 sps:$4 sm:$0xff]  }
 0x4bf   :  { %1923 = vmatpush1.bf16.msra.mxu1 %v4936_v1  ;;  %v5002_v1 = vld [vmem:[%s6878_s3 + $0x314] ss:$8 sps:$4 sm:$0xff]  }
 0x4c0   :  { %1924 = vmatprep.subr.bf16.mxu1 %v4941_v17  ;;  %v5000_v17 = vld [vmem:[%s6878_s3 + $0x310] ss:$8 sps:$4 sm:$0xff]  }
 0x4c3   :  { %1925 = vmatpush1.bf16.msra.mxu1 %v4939_v21  ;;  %v5005_v21 = vld [vmem:[%s6878_s3 + $0x324] ss:$8 sps:$4 sm:$0xff]  }
 0x4c4   :  { %1926 = vmatprep.subr.bf16.mxu1 %v4944_v46  ;;  %v5003_v46 = vld [vmem:[%s6878_s3 + $0x320] ss:$8 sps:$4 sm:$0xff]  }
 0x4c7   :  { %1927 = vmatpush1.bf16.msra.mxu1 %v4942_v7  ;;  %v4277_v7 = vld [vmem:[%s6878_s3 + $0x340] sm:$0xff] }
 0x4c8   :  { %4192 = vmatprep.subr.msk.bf16.mxu1 %vm1182_vm2, %v4191_v43  ;;  %v5006_v43 = vld [vmem:[%s6878_s3 + $0x330] ss:$8 sps:$4 sm:$0xff]   ;;  %v4299_v54 = vcombine.high %v4277_v7, %v4277_v7 }
 0x4cb   :  { %1929 = vmatpush1.bf16.msra.mxu1 %v1903_v56  ;;  %v4298_v56 = vcombine.low %v4277_v7, %v4277_v7 }
 0x4cc   :  { %2177 = vmatprep.subr.bf16.mxu1 %v4949_v16 }
 0x4cd   :  { %v2441_v16 = vsel %vm1182_vm2, %v4298_v56, 0 }
 0x4ce   :  { %1941 = vmatmul.mubr.bf16.vlgmr.msra.gmra.mrb[20].mxu1 %v1765_v34  ;;  %v4956_v34 = vld [vmem:[%s6878_s3 + $0x228] ss:$8 sps:$4 sm:$0xff]  }
 0x4cf   :  { %2178 = vmatpush1.bf16.msra.mxu1 %v4947_v14  ;;  %4194 = vmatprep.mubr.msk.bf16.mxu1 %vm746_vm1, %v1768_v24  ;;  %v2306_v14 = vpack.c.bf16 %v6038_v30, %v6038_v30  ;;  %v2305_v24 = vpack.c.bf16 %v6033_v29, %v6033_v29  ;;  %v2521_v30 = vld [vmem:[%s6881_s6 + $0x1a8] sm:$0xff]  ;;  %v6312_v29 = vpack.c.bf16 %v2520_v6, %v2518_v59 }
 0x4d0   :  { %2179 = vmatprep.subr.bf16.mxu1 %v4952_v26  ;;  %v2519_v26 = vld [vmem:[%s6881_s6 + $0x198] sm:$0xff] }
 0x4d3   :  { %2180 = vmatpush1.bf16.msra.mxu1 %v4950_v49  ;;  %v6301_v49 = vpack.c.bf16 %v2521_v30, %v2519_v26 }
 0x4d4   :  { %2181 = vmatprep.subr.bf16.mxu1 %v4955_v40  ;;  %v2525_v40 = vld [vmem:[%s6881_s6 + $0x1c8] sm:$0xff] }
 0x4d5   :  { %4619 = vmatprep.subr.bf16.mxu0 %v6301_v49 }
 0x4d6   :  { %1951 = vmatmul.mubr.bf16.gmra.mrb[24].mxu1 %v1767_v3  ;;  %v2522_v3 = vld [vmem:[%s6881_s6 + $0x1b0] sm:$0xff]  ;;  %4621 = vmatpush1.bf16.msra.mxu0 %v6312_v29 }
 0x4d7   :  { %2182 = vmatpush1.bf16.msra.mxu1 %v4953_v5  ;;  %4247 = vmatprep.mubr.msk.bf16.mxu1 %vm746_vm1, %v2035_v25  ;;  %v4965_v25 = vld [vmem:[%s6878_s3 + $0x258] ss:$8 sps:$4 sm:$0xff]  }
 0x4d8   :  { %2183 = vmatprep.subr.bf16.mxu1 %v4958_v61  ;;  %v2524_v5 = vld [vmem:[%s6881_s6 + $0x1c0] sm:$0xff] }
 0x4db   :  { %2184 = vmatpush1.bf16.msra.mxu1 %v4956_v34  ;;  %v6327_v34 = vpack.c.bf16 %v2524_v5, %v2522_v3 }
 0x4dc   :  { %2185 = vmatprep.subr.bf16.mxu1 %v4961_v38  ;;  %v2527_v38 = vld [vmem:[%s6881_s6 + $0x1d8] sm:$0xff] }
 0x4df   :  { %2186 = vmatpush1.bf16.msra.mxu1 %v4959_v58  ;;  %v2529_v58 = vld [vmem:[%s6881_s6 + $0x1e8] sm:$0xff] }
 0x4e0   :  { %2187 = vmatprep.subr.bf16.mxu1 %v4964_v0  ;;  %v6337_v0 = vpack.c.bf16 %v2529_v58, %v2527_v38 }
 0x4e3   :  { %2188 = vmatpush1.bf16.msra.mxu1 %v4962_v9  ;;  %v2526_v9 = vld [vmem:[%s6881_s6 + $0x1d0] sm:$0xff] }
 0x4e4   :  { %2189 = vmatprep.subr.bf16.mxu1 %v4967_v23  ;;  %v2528_v23 = vld [vmem:[%s6881_s6 + $0x1e0] sm:$0xff] }
 0x4e7   :  { %2190 = vmatpush1.bf16.msra.mxu1 %v4965_v25  ;;  %v6345_v25 = vpack.c.bf16 %v2528_v23, %v2526_v9 }
 0x4e8   :  { %2191 = vmatprep.subr.bf16.mxu1 %v4970_v39  ;;  %v2531_v39 = vld [vmem:[%s6881_s6 + $0x1f8] sm:$0xff] }
 0x4eb   :  { %2192 = vmatpush1.bf16.msra.mxu1 %v4968_v31  ;;  %v2533_v31 = vld [vmem:[%s6881_s6 + $0x208] sm:$0xff] }
 0x4ec   :  { %2193 = vmatprep.subr.bf16.mxu1 %v4973_v32  ;;  %v6355_v32 = vpack.c.bf16 %v2533_v31, %v2531_v39 }
 0x4ef   :  { %2194 = vmatpush1.bf16.msra.mxu1 %v4971_v42  ;;  %v2530_v42 = vld [vmem:[%s6881_s6 + $0x1f0] sm:$0xff] }
 0x4f0   :  { %2195 = vmatprep.subr.bf16.mxu1 %v4976_v35  ;;  %v2532_v35 = vld [vmem:[%s6881_s6 + $0x200] sm:$0xff] }
 0x4f1   :  { %v6363_v36 = vpack.c.bf16 %v2532_v35, %v2530_v42 }
 0x4f3   :  { %2196 = vmatpush1.bf16.msra.mxu1 %v4974_v41  ;;  %v2535_v41 = vld [vmem:[%s6881_s6 + $0x218] sm:$0xff] }
 0x4f4   :  { %4246 = vmatprep.subr.msk.bf16.mxu1 %vm1182_vm2, %v4245_v55  ;;  %v2537_v55 = vld [vmem:[%s6881_s6 + $0x228] sm:$0xff] }
 0x4f5   :  { %v6373_v37 = vpack.c.bf16 %v2537_v55, %v2535_v41 }
 0x4f7   :  { %2198 = vmatpush1.bf16.msra.mxu1 %v2172_v44  ;;  %v2534_v44 = vld [vmem:[%s6881_s6 + $0x210] sm:$0xff] }
 0x4f8   :  { %2446 = vmatprep.subr.bf16.mxu1 %v4981_v45  ;;  %v2536_v45 = vld [vmem:[%s6881_s6 + $0x220] sm:$0xff] }
 0x4fa   :  { %2210 = vmatmul.mubr.bf16.vlgmr.msra.gmra.mrb[20].mxu1 %v2034_v19  ;;  %v4988_v19 = vld [vmem:[%s6878_s3 + $0x2d0] ss:$8 sps:$4 sm:$0xff]  }
 0x4fb   :  { %2447 = vmatpush1.bf16.msra.mxu1 %v4979_v48  ;;  %4248 = vmatprep.mubr.msk.bf16.mxu1 %vm746_vm1, %v2037_v51  ;;  %v6381_v48 = vpack.c.bf16 %v2536_v45, %v2534_v44  ;;  %v2539_v51 = vld [vmem:[%s6881_s6 + $0x238] sm:$0xff] }
 0x4fc   :  { %2448 = vmatprep.subr.bf16.mxu1 %v4984_v27  ;;  %v2541_v27 = vld [vmem:[%s6881_s6 + $0x248] sm:$0xff] }
 0x4ff   :  { %2449 = vmatpush1.bf16.msra.mxu1 %v4982_v10  ;;  %v2538_v10 = vld [vmem:[%s6881_s6 + $0x230] sm:$0xff] }
 0x500   :  { %2450 = vmatprep.subr.bf16.mxu1 %v4987_v33  ;;  %v6393_v33 = vpack.c.bf16 %v2541_v27, %v2539_v51 }
 0x502   :  { %2220 = vmatmul.mubr.bf16.gmra.mrb[24].mxu1 %v2036_v57  ;;  %v2540_v57 = vld [vmem:[%s6881_s6 + $0x240] sm:$0xff] }
 0x503   :  { %2451 = vmatpush1.bf16.msra.mxu1 %v4985_v60  ;;  %4301 = vmatprep.mubr.msk.bf16.mxu1 %vm746_vm1, %v2304_v20  ;;  %v4997_v20 = vld [vmem:[%s6878_s3 + $0x300] ss:$8 sps:$4 sm:$0xff]   ;;  %v2543_v60 = vld [vmem:[%s6881_s6 + $0x258] sm:$0xff] }
 0x504   :  { %2452 = vmatprep.subr.bf16.mxu1 %v4990_v12  ;;  %v2545_v12 = vld [vmem:[%s6881_s6 + $0x268] sm:$0xff] }
 0x507   :  { %2453 = vmatpush1.bf16.msra.mxu1 %v4988_v19  ;;  %v6405_v19 = vpack.c.bf16 %v2540_v57, %v2538_v10 }
 0x508   :  { %2454 = vmatprep.subr.bf16.mxu1 %v4993_v28  ;;  %v6408_v28 = vpack.c.bf16 %v2545_v12, %v2543_v60 }
 0x50b   :  { %2455 = vmatpush1.bf16.msra.mxu1 %v4991_v13  ;;  %v2542_v13 = vld [vmem:[%s6881_s6 + $0x250] sm:$0xff] }
 0x50c   :  { %2456 = vmatprep.subr.bf16.mxu1 %v4996_v62  ;;  %v2544_v62 = vld [vmem:[%s6881_s6 + $0x260] sm:$0xff] }
 0x50f   :  { %2457 = vmatpush1.bf16.msra.mxu1 %v4994_v8  ;;  %v2547_v8 = vld [vmem:[%s6881_s6 + $0x278] sm:$0xff] }
 0x510   :  { %2458 = vmatprep.subr.bf16.mxu1 %v4999_v15  ;;  %v2549_v15 = vld [vmem:[%s6881_s6 + $0x288] sm:$0xff] }
 0x513   :  { %2459 = vmatpush1.bf16.msra.mxu1 %v4997_v20  ;;  %v6423_v20 = vpack.c.bf16 %v2544_v62, %v2542_v13 }
 0x514   :  { %2460 = vmatprep.subr.bf16.mxu1 %v5002_v1  ;;  %v6426_v1 = vpack.c.bf16 %v2549_v15, %v2547_v8 }
 0x517   :  { %2461 = vmatpush1.bf16.msra.mxu1 %v5000_v17  ;;  %v2546_v17 = vld [vmem:[%s6881_s6 + $0x270] sm:$0xff] }
 0x518   :  { %2462 = vmatprep.subr.bf16.mxu1 %v5005_v21  ;;  %v2548_v21 = vld [vmem:[%s6881_s6 + $0x280] sm:$0xff] }
 0x51b   :  { %2463 = vmatpush1.bf16.msra.mxu1 %v5003_v46  ;;  %v4648_v46 = vpack.c.bf16 %v2548_v21, %v2546_v17 }
 0x51c   :  { %2464 = vmatprep.subr.bf16.mxu1 %v5008_v4 }
 0x51f   :  { %2465 = vmatpush1.bf16.msra.mxu1 %v5006_v43 }
 0x520   :  { %4300 = vmatprep.subr.msk.bf16.mxu1 %vm1182_vm2, %v4299_v54 }
 0x523   :  { %2467 = vmatpush1.bf16.msra.mxu1 %v2441_v16 }
 0x524   :  { %3321 = vmatprep.subr.bf16.mxu1 %v5113_v2 }
 0x526   :  { %2479 = vmatmul.mubr.bf16.vlgmr.msra.gmra.mrb[20].mxu1 %v2303_v11  ;;  %v2523_v11 = vld [vmem:[%s6881_s6 + $0x1b8] sm:$0xff] }
 0x527   :  { %4302 = vmatprep.mubr.msk.bf16.mxu1 %vm746_vm1, %v2306_v14  ;;  %v6324_v61 = vpack.c.bf16 %v2525_v40, %v2523_v11 }
 0x529   :  { %4623 = vmatprep.subr.bf16.mxu0 %v6324_v61 }
 0x52a   :  { %4625 = vmatpush1.bf16.msra.mxu0 %v6327_v34 }
 0x52b   :  { %4627 = vmatprep.subr.bf16.mxu0 %v6337_v0 }
 0x52e   :  { %2489 = vmatmul.mubr.bf16.gmra.mrb[24].mxu1 %v2305_v24  ;;  %4629 = vmatpush1.bf16.msra.mxu0 %v6345_v25 }
 0x52f   :  { %4631 = vmatprep.subr.bf16.mxu0 %v6355_v32 }
 0x532   :  { %4633 = vmatpush1.bf16.msra.mxu0 %v6363_v36 }
 0x533   :  { %4635 = vmatprep.subr.bf16.mxu0 %v6373_v37 }
 0x536   :  { %4637 = vmatpush1.bf16.msra.mxu0 %v6381_v48 }
 0x537   :  { %4639 = vmatprep.subr.bf16.mxu0 %v6393_v33 }
 0x53a   :  { %4641 = vmatpush1.bf16.msra.mxu0 %v6405_v19 }
 0x53b   :  { %4643 = vmatprep.subr.bf16.mxu0 %v6408_v28 }
 0x53e   :  { %4645 = vmatpush1.bf16.msra.mxu0 %v6423_v20 }
 0x53f   :  { %4647 = vmatprep.subr.bf16.mxu0 %v6426_v1 }
 0x542   :  { %4649 = vmatpush1.bf16.msra.mxu0 %v4648_v46 }
 0x543   :  { %4651 = vmatprep.subr.bf16.mxu0 %v6070_v47 }
 0x5f9   :  { %v6437_v4 = vpop.f32.mrb[20].mxu1 }
 0x5fa   :  { %v2482_v7 = vpop.f32.mrb[21].mxu1 }
 0x5fb   :  { %2504 = vst.msk [vmem:[#allocation3 + $0x8] sm:$0xff] %vm96_vm0, %v2482_v7  ;;  %v6440_v43 = vpop.f32.mrb[22].mxu1 }
 0x5fc   :  { %v2486_v54 = vpop.f32.mrb[23].mxu1  ;;  %v2556_v56 = vadd.f32 %v6440_v43, %v6437_v4 }
 0x5fd   :  { %2506 = vst.msk [vmem:[#allocation3 + $0x18] sm:$0xff] %vm96_vm0, %v2486_v54 }
 0x601   :  { %v2490_v16 = vpop.f32.mrb[24].mxu1 }
 0x602   :  { %2507 = vst [vmem:[#allocation3 + $0x20] sm:$0xf] %v2490_v16  ;;  %v2492_v14 = vpop.f32.mrb[25].mxu1  ;;  %v2551_v30 = vld [vmem:[#allocation3 + $0x8] sm:$0xff] }
 0x603   :  { %2509 = vst.msk [vmem:[#allocation3 + $0x28] sm:$0xf] %vm2508_vm4, %v2492_v14  ;;  %v2494_v47 = vpop.f32.mrb[26].mxu1  ;;  %v2565_v6 = vsel %vm96_vm0, %v2551_v30, 0.0 }
 0x604   :  { %v2553_v24 = vld [vmem:[#allocation3 + $0x18] sm:$0xff]  ;;  %v2495_v26 = vpop.f32.mrb[27].mxu1 }
 0x605   :  { %v2566_v59 = vsel %vm96_vm0, %v2553_v24, 0.0 }
 0x606   :  { %v2567_v3 = vadd.f32 %v2566_v59, %v2565_v6  ;;  %v5012_v59 = vld [vmem:[%s6880_s5 + $0xa8] sm:$0xff]   ;;  %v5013_v6 = vld [vmem:[%s6880_s5 + $0xb0] sm:$0xff]  }
 0x609   :  { %v2554_v11 = vld [vmem:[#allocation3 + $0x20] sm:$0xf] }
 0x60a   :  { %v2555_v40 = vld [vmem:[#allocation3 + $0x28] sm:$0xf]  ;;  %v2557_v5 = vsel %vm1182_vm2, %v2554_v11, 0.0 }
 0x60b   :  { %v2568_v38 = vsel %vm2508_vm4, %v2555_v40, 0.0  ;;  %v2558_v58 = vadd.f32 %v2557_v5, %v2556_v56  ;;  %v5017_v5 = vld [vmem:[%s6880_s5 + $0xd0] sm:$0xff]  }
 0x60c   :  { %v2569_v9 = vadd.f32 %v2568_v38, %v2567_v3  ;;  %v5016_v3 = vld [vmem:[%s6880_s5 + $0xc8] sm:$0xff]   ;;  %v5018_v38 = vld [vmem:[%s6880_s5 + $0xd8] sm:$0xff]  }
 0x60d   :  { %v2559_v23 = vrot.slane %v2558_v58, 4 }
 0x60e   :  { %v2570_v39 = vrot.slane %v2569_v9, 4 }
 0x60f   :  { %v2560_v31 = vadd.f32 %v2559_v23, %v2558_v58  ;;  %v5019_v58 = vld [vmem:[%s6880_s5 + $0xe0] sm:$0xff]  }
 0x610   :  { %v2571_v42 = vadd.f32 %v2570_v39, %v2569_v9  ;;  %v5020_v9 = vld [vmem:[%s6880_s5 + $0xe8] sm:$0xff]  }
 0x611   :  { %v2561_v35 = vrot.slane %v2560_v31, 2 }
 0x612   :  { %v2572_v41 = vrot.slane %v2571_v42, 2 }
 0x613   :  { %v2562_v55 = vadd.f32 %v2561_v35, %v2560_v31 }
 0x614   :  { %v2573_v44 = vadd.f32 %v2572_v41, %v2571_v42 }
 0x615   :  { %v2563_v45 = vrot.slane %v2562_v55, 1 }
 0x616   :  { %v2574_v51 = vrot.slane %v2573_v44, 1 }
 0x617   :  { %v2564_v10 = vadd.f32 %v2563_v45, %v2562_v55 }
 0x618   :  { %v2575_v27 = vadd.f32 %v2574_v51, %v2573_v44 }
 0x61a   :  { %4303 = vmatprep.mubr.msk.f32.mxu0 %vm96_vm0, %v2575_v27  ;;  %v4305_v27 = vld [vmem:[%s6882_s7 + $0x2] ss:$8 sm:$0x3] }
 0x61b   :  { %2644 = vmatmul.mubr.f32.vlgmr.msra.gmra.mrb[40].mxu0 %v2564_v10 }
 0x61c   :  { %4653 = vmatpush1.bf16.msra.mxu0 %v6084_v50  ;;  %v5011_v50 = vld [vmem:[%s6880_s5 + $0xa0] sm:$0xff]  }
 0x61d   :  { %4655 = vmatprep.subr.bf16.mxu0 %v6086_v22  ;;  %3322 = vmatpush1.bf16.msra.mxu1 %v5011_v50  ;;  %v4306_v50 = vld [vmem:[%s6882_s7 + $0x3] ss:$8 sm:$0x3] }
 0x61e   :  { %3323 = vmatprep.subr.bf16.mxu1 %v5113_v2 }
 0x620   :  { %4657 = vmatpush1.bf16.msra.mxu0 %v6096_v53 }
 0x621   :  { %4659 = vmatprep.subr.bf16.mxu0 %v6301_v49  ;;  %3324 = vmatpush1.bf16.msra.mxu1 %v5012_v59 }
 0x622   :  { %3325 = vmatprep.subr.bf16.mxu1 %v5113_v2 }
 0x624   :  { %4661 = vmatpush1.bf16.msra.mxu0 %v6312_v29 }
 0x625   :  { %4663 = vmatprep.subr.bf16.mxu0 %v6324_v61  ;;  %3326 = vmatpush1.bf16.msra.mxu1 %v5013_v6 }
 0x626   :  { %3327 = vmatprep.subr.bf16.mxu1 %v5113_v2 }
 0x628   :  { %4665 = vmatpush1.bf16.msra.mxu0 %v6327_v34 }
 0x629   :  { %4667 = vmatprep.subr.bf16.mxu0 %v6337_v0 }
 0x62c   :  { %4669 = vmatpush1.bf16.msra.mxu0 %v6345_v25 }
 0x62d   :  { %4671 = vmatprep.subr.bf16.mxu0 %v6355_v32 }
 0x630   :  { %4673 = vmatpush1.bf16.msra.mxu0 %v6363_v36 }
 0x631   :  { %4675 = vmatprep.subr.bf16.mxu0 %v6373_v37 }
 0x634   :  { %4677 = vmatpush1.bf16.msra.mxu0 %v6381_v48 }
 0x635   :  { %4679 = vmatprep.subr.bf16.mxu0 %v6393_v33 }
 0x638   :  { %4681 = vmatpush1.bf16.msra.mxu0 %v6405_v19 }
 0x639   :  { %4683 = vmatprep.subr.bf16.mxu0 %v6408_v28 }
 0x63c   :  { %4685 = vmatpush1.bf16.msra.mxu0 %v6423_v20 }
 0x63d   :  { %4687 = vmatprep.subr.bf16.mxu0 %v6426_v1 }
 0x640   :  { %4689 = vmatpush1.bf16.msra.mxu0 %v4648_v46 }
 0x6ee   :  { %v2645_v22 = vpop.f32.mrb[40].mxu0 }
 0x6ef   :  { %v2650_v53 = vmul.f32 0.005, %v2645_v22  ;;  %v2647_v49 = vpop.f32.mrb[41].mxu0 }
 0x6f0   :  { %v2651_v29 = vmul.f32 0.005, %v2647_v49 }
 0x6f1   :  { %v2655_v61 = vrot.slane %v2650_v53, %v5603_v52 }
 0x6f2   :  { %v2659_v34 = vrot.slane %v2651_v29, %v5603_v52  ;;  %v2820_v29 = vrot.slane %v4306_v50, %v5695_v18 }
 0x6f3   :  { %v6476_v0 = vsub.f32 %v6437_v4, %v2655_v61  ;;  %v6479_v25 = vsub.f32 %v6440_v43, %v2655_v61  ;;  %v6481_v32 = vsub.f32 %v2554_v11, %v2655_v61  ;;  %v5014_v11 = vld [vmem:[%s6880_s5 + $0xb8] sm:$0xff]   ;;  %v2816_v61 = vrot.slane %v4306_v50, %v5603_v52  ;;  %v4354_v50 = vld [vmem:[%s6879_s4 + $0x2] sm:$0x1] }
 0x6f4   :  { %v6483_v36 = vsub.f32 %v2551_v30, %v2659_v34  ;;  %v6485_v37 = vsub.f32 %v2553_v24, %v2659_v34  ;;  %v6487_v48 = vsub.f32 %v2555_v40, %v2659_v34  ;;  %3328 = vmatpush1.bf16.msra.mxu1 %v5014_v11  ;;  %v5015_v40 = vld [vmem:[%s6880_s5 + $0xc0] sm:$0xff]  }
 0x6f5   :  { %v2666_v33 = vmul.f32 %v6476_v0, %v6476_v0  ;;  %v2668_v57 = vmul.f32 %v6479_v25, %v6479_v25  ;;  %v2670_v60 = vmul.f32 %v6481_v32, %v6481_v32  ;;  %3329 = vmatprep.subr.bf16.mxu1 %v5113_v2 }
 0x6f6   :  { %v2667_v12 = vmul.f32 %v6483_v36, %v6483_v36  ;;  %v2669_v19 = vmul.f32 %v6485_v37, %v6485_v37  ;;  %v2671_v28 = vmul.f32 %v6487_v48, %v6487_v48 }
 0x6f7   :  { %v2672_v13 = vadd.f32 %v2668_v57, %v2666_v33  ;;  %v2673_v62 = vsel %vm1182_vm2, %v2670_v60, 0.0 }
 0x6f8   :  { %v2681_v8 = vsel %vm96_vm0, %v2667_v12, 0.0  ;;  %v2682_v15 = vsel %vm96_vm0, %v2669_v19, 0.0  ;;  %v2684_v17 = vsel %vm2508_vm4, %v2671_v28, 0.0  ;;  %3330 = vmatpush1.bf16.msra.mxu1 %v5015_v40 }
 0x6f9   :  { %v2674_v20 = vadd.f32 %v2673_v62, %v2672_v13  ;;  %v2683_v1 = vadd.f32 %v2682_v15, %v2681_v8  ;;  %3331 = vmatprep.subr.bf16.mxu1 %v5113_v2 }
 0x6fb   :  { %v2685_v21 = vadd.f32 %v2684_v17, %v2683_v1  ;;  %v2675_v46 = vrot.slane %v2674_v20, 4 }
 0x6fc   :  { %3332 = vmatpush1.bf16.msra.mxu1 %v5016_v3 }
 0x6fd   :  { %v2686_v4 = vrot.slane %v2685_v21, 4  ;;  %v2676_v7 = vadd.f32 %v2675_v46, %v2674_v20  ;;  %3333 = vmatprep.subr.bf16.mxu1 %v5113_v2  ;;  %v4309_v46 = vld [vmem:[%s6879_s4 + $0x1] sm:$0x1] }
 0x6ff   :  { %v2687_v43 = vadd.f32 %v2686_v4, %v2685_v21  ;;  %v2677_v54 = vrot.slane %v2676_v7, 2  ;;  %v2839_v21 = vld [vmem:[%s6879_s4] sm:$0x1]  ;;  %v5021_v4 = vld [vmem:[%s6880_s5 + $0x50] sm:$0xff]  }
 0x700   :  { %3334 = vmatpush1.bf16.msra.mxu1 %v5017_v5 }
 0x701   :  { %v2688_v56 = vrot.slane %v2687_v43, 2  ;;  %v2678_v16 = vadd.f32 %v2677_v54, %v2676_v7  ;;  %3335 = vmatprep.subr.bf16.mxu1 %v5113_v2  ;;  %v5022_v7 = vld [vmem:[%s6880_s5 + $0x58] sm:$0xff]   ;;  %v5024_v54 = vld [vmem:[%s6880_s5 + $0x68] sm:$0xff]  }
 0x703   :  { %v2689_v14 = vadd.f32 %v2688_v56, %v2687_v43  ;;  %v2679_v47 = vrot.slane %v2678_v16, 1  ;;  %v5023_v43 = vld [vmem:[%s6880_s5 + $0x60] sm:$0xff]   ;;  %v5025_v56 = vld [vmem:[%s6880_s5 + $0x70] sm:$0xff]  }
 0x704   :  { %3336 = vmatpush1.bf16.msra.mxu1 %v5018_v38 }
 0x705   :  { %v2690_v24 = vrot.slane %v2689_v14, 1  ;;  %v2680_v30 = vadd.f32 %v2679_v47, %v2678_v16  ;;  %3337 = vmatprep.subr.bf16.mxu1 %v5113_v2  ;;  %v5026_v16 = vld [vmem:[%s6880_s5 + $0x78] sm:$0xff]   ;;  %v5028_v47 = vld [vmem:[%s6880_s5 + $0x88] sm:$0xff]  }
 0x707   :  { %v2691_v26 = vadd.f32 %v2690_v24, %v2689_v14  ;;  %v5027_v14 = vld [vmem:[%s6880_s5 + $0x80] sm:$0xff]   ;;  %v5029_v24 = vld [vmem:[%s6880_s5 + $0x90] sm:$0xff]  }
 0x708   :  { %3338 = vmatpush1.bf16.msra.mxu1 %v5019_v58  ;;  %v5031_v58 = vld [vmem:[%s6880_s5] sm:$0xff]  }
 0x709   :  { %4304 = vmatprep.mubr.msk.f32.mxu0 %vm96_vm0, %v2691_v26  ;;  %3339 = vmatprep.subr.bf16.mxu1 %v5113_v2  ;;  %v5030_v26 = vld [vmem:[%s6880_s5 + $0x98] sm:$0xff]  }
 0x70a   :  { %2760 = vmatmul.mubr.f32.vlgmr.msra.gmra.mrb[42].mxu0 %v2680_v30 }
 0x70b   :  { %2883 = vmatprep.mubr.bf16.mxu0 %v5113_v2 }
 0x70c   :  { %3340 = vmatpush1.bf16.msra.mxu1 %v5020_v9 }
 0x7dd   :  { %v2761_v23 = vpop.f32.mrb[42].mxu0 }
 0x7de   :  { %v2766_v39 = vmul.f32 0.005, %v2761_v23  ;;  %v2763_v31 = vpop.f32.mrb[43].mxu0 }
 0x7df   :  { %v2767_v42 = vmul.f32 0.005, %v2763_v31  ;;  %v5032_v31 = vld [vmem:[%s6880_s5 + $0x8] sm:$0xff]  }
 0x7e0   :  { %v2770_v35 = vadd.f32 1e-05, %v2766_v39 }
 0x7e1   :  { %v2771_v41 = vadd.f32 1e-05, %v2767_v42  ;;  %v5033_v42 = vld [vmem:[%s6880_s5 + $0x10] sm:$0xff]  }
 0x7e2   :  { %5081 = vrsqrt.f32 %v2770_v35  ;;  %v5034_v35 = vld [vmem:[%s6880_s5 + $0x18] sm:$0xff]  }
 0x7e3   :  { %5083 = vrsqrt.f32 %v2771_v41  ;;  %v5035_v41 = vld [vmem:[%s6880_s5 + $0x20] sm:$0xff]  }
 0x7ec   :  { %v5082_v55 = vpop.eup %5081 }
 0x7ed   :  { %v5084_v44 = vpop.eup %5083 }
 0x7ee   :  { %v2776_v45 = vcombine.low %v5082_v55, %v5084_v44  ;;  %v5036_v55 = vld [vmem:[%s6880_s5 + $0x28] sm:$0xff]   ;;  %v5037_v44 = vld [vmem:[%s6880_s5 + $0x30] sm:$0xff]  }
 0x7f0   :  { %v2783_v51 = vrot.slane %v2776_v45, %v5687_v63  ;;  %v5038_v45 = vld [vmem:[%s6880_s5 + $0x38] sm:$0xff]  }
 0x7f2   :  { %v2790_v10 = vrot.slane %v2783_v51, %v5687_v63  ;;  %v5039_v51 = vld [vmem:[%s6880_s5 + $0x40] sm:$0xff]  }
 0x7f4   :  { %v2792_v22 = vmul.f32 %v4305_v27, %v2790_v10  ;;  %v5040_v27 = vld [vmem:[%s6880_s5 + $0x48] sm:$0xff]  }
 0x7f6   :  { %v2797_v53 = vrot.slane %v2792_v22, %v5603_v52  ;;  %v2801_v49 = vrot.slane %v2792_v22, %v5695_v18  ;;  %v4388_v22 = vld [vmem:[%s6879_s4 + $0x3] sm:$0x1] }
 0x7f8   :  { %v2805_v34 = vmul.f32 %v2801_v49, %v6483_v36  ;;  %v2807_v33 = vmul.f32 %v2801_v49, %v6485_v37  ;;  %v2804_v57 = vmul.f32 %v2797_v53, %v6476_v0  ;;  %v2806_v63 = vmul.f32 %v2797_v53, %v6479_v25 }
 0x7f9   :  { %v2809_v60 = vmul.f32 %v2801_v49, %v6487_v48  ;;  %v2808_v12 = vmul.f32 %v2797_v53, %v6481_v32  ;;  %v5041_v53 = vld [vmem:[%s6880_s5 + $0xf0] sm:$0xff]   ;;  %v5042_v49 = vld [vmem:[%s6880_s5 + $0xf8] sm:$0xff]  }
 0x7fa   :  { %v2824_v19 = vadd.f32 %v2820_v29, %v2805_v34  ;;  %v2826_v28 = vadd.f32 %v2820_v29, %v2807_v33  ;;  %v2823_v13 = vadd.f32 %v2816_v61, %v2804_v57  ;;  %v2825_v62 = vadd.f32 %v2816_v61, %v2806_v63  ;;  %v5045_v34 = vld [vmem:[%s6880_s5 + $0x110] sm:$0xff]   ;;  %v5046_v33 = vld [vmem:[%s6880_s5 + $0x118] sm:$0xff]   ;;  %v5047_v57 = vld [vmem:[%s6880_s5 + $0x120] sm:$0xff]  }
 0x7fb   :  { %v2828_v8 = vadd.f32 %v2820_v29, %v2809_v60  ;;  %v2827_v18 = vadd.f32 %v2816_v61, %v2808_v12  ;;  %v5043_v29 = vld [vmem:[%s6880_s5 + $0x100] sm:$0xff]   ;;  %v5044_v61 = vld [vmem:[%s6880_s5 + $0x108] sm:$0xff]   ;;  %v5049_v60 = vld [vmem:[%s6880_s5 + $0x130] sm:$0xff]  }
 0x7fc   :  { %v2830_v15 = vmax.f32 %v2824_v19, 0.0  ;;  %v2832_v52 = vmax.f32 %v2826_v28, 0.0  ;;  %v2829_v20 = vmax.f32 %v2823_v13, 0.0  ;;  %v2831_v36 = vmax.f32 %v2825_v62, 0.0  ;;  %v5048_v63 = vld [vmem:[%s6880_s5 + $0x128] sm:$0xff]   ;;  %v5050_v12 = vld [vmem:[%s6880_s5 + $0x138] sm:$0xff]  }
 0x7fd   :  { %v2834_v1 = vmax.f32 %v2828_v8, 0.0  ;;  %v2833_v37 = vmax.f32 %v2827_v18, 0.0 }
 0x7fe   :  { %v6560_v17 = vpack.c.bf16 %v2832_v52, %v2830_v15  ;;  %v6562_v0 = vpack.c.bf16 %v2831_v36, %v2829_v20 }
 0x7ff   :  { %v6566_v25 = vpack.c.bf16 %v2834_v1, %v2834_v1  ;;  %v2837_v32 = vpack.c.bf16 %v2833_v37, %v2833_v37 }
 0x800   :  { %2851 = vmatprep.subr.bf16.mxu0 %v6560_v17  ;;  %3540 = vmatprep.subr.bf16.mxu1 %v6560_v17 }
 0x801   :  { %2852 = vmatpush1.bf16.msra.mxu0 %v6562_v0  ;;  %v6572_v48 = vsel %vm2844_vm5, %v2837_v32, 0 }
 0x802   :  { %4307 = vmatprep.subr.msk.bf16.mxu0 %vm2844_vm5, %v6566_v25 }
 0x805   :  { %2854 = vmatpush1.bf16.msra.mxu0 %v6572_v48 }
 0x806   :  { %2919 = vmatprep.subr.bf16.mxu0 %v6560_v17 }
 0x808   :  { %4308 = vmatmul.mubr.msk.bf16.vlgmr.msra.gmra.mrb[44].mxu0 %vm2840_vm6, %v2839_v21 }
 0x809   :  { %2920 = vmatpush1.bf16.msra.mxu0 %v6562_v0  ;;  %2951 = vmatprep.mubr.bf16.mxu0 %v5113_v2 }
 0x80a   :  { %4310 = vmatprep.subr.msk.bf16.mxu0 %vm2844_vm5, %v6566_v25 }
 0x80d   :  { %2922 = vmatpush1.bf16.msra.mxu0 %v6572_v48 }
 0x80e   :  { %3046 = vmatprep.subr.bf16.mxu0 %v5113_v2 }
 0x810   :  { %4311 = vmatmul.mubr.msk.bf16.vlgmr.msra.gmra.mrb[48].mxu0 %vm2840_vm6, %v4309_v46 }
 0x811   :  { %3047 = vmatpush1.bf16.msra.mxu0 %v5021_v4 }
 0x812   :  { %3048 = vmatprep.subr.bf16.mxu0 %v5113_v2 }
 0x815   :  { %3049 = vmatpush1.bf16.msra.mxu0 %v5022_v7 }
 0x816   :  { %3050 = vmatprep.subr.bf16.mxu0 %v5113_v2 }
 0x819   :  { %3051 = vmatpush1.bf16.msra.mxu0 %v5023_v43 }
 0x81a   :  { %3052 = vmatprep.subr.bf16.mxu0 %v5113_v2 }
 0x81d   :  { %3053 = vmatpush1.bf16.msra.mxu0 %v5024_v54  ;;  %v4422_v54 = vld [vmem:[%s6879_s4 + $0x4] sm:$0x1] }
 0x81e   :  { %3054 = vmatprep.subr.bf16.mxu0 %v5113_v2 }
 0x821   :  { %3055 = vmatpush1.bf16.msra.mxu0 %v5025_v56  ;;  %v5051_v56 = vld [vmem:[%s6880_s5 + $0x140] sm:$0xff]  }
 0x822   :  { %3056 = vmatprep.subr.bf16.mxu0 %v5113_v2 }
 0x825   :  { %3057 = vmatpush1.bf16.msra.mxu0 %v5026_v16 }
 0x826   :  { %3058 = vmatprep.subr.bf16.mxu0 %v5113_v2 }
 0x829   :  { %3059 = vmatpush1.bf16.msra.mxu0 %v5027_v14  ;;  %v5054_v14 = vld [vmem:[%s6880_s5 + $0x158] sm:$0xff]  }
 0x82a   :  { %3060 = vmatprep.subr.bf16.mxu0 %v5113_v2 }
 0x82d   :  { %3061 = vmatpush1.bf16.msra.mxu0 %v5028_v47  ;;  %v5055_v47 = vld [vmem:[%s6880_s5 + $0x160] sm:$0xff]  }
 0x82e   :  { %3062 = vmatprep.subr.bf16.mxu0 %v5113_v2 }
 0x831   :  { %3063 = vmatpush1.bf16.msra.mxu0 %v5029_v24  ;;  %v5056_v24 = vld [vmem:[%s6880_s5 + $0x168] sm:$0xff]  }
 0x832   :  { %3064 = vmatprep.subr.bf16.mxu0 %v5113_v2 }
 0x835   :  { %3065 = vmatpush1.bf16.msra.mxu0 %v5030_v26  ;;  %v5057_v26 = vld [vmem:[%s6880_s5 + $0x170] sm:$0xff]  }
 0x836   :  { %3149 = vmatprep.subr.bf16.mxu0 %v5113_v2 }
 0x8db   :  { %v2885_v30 = vpop.f32.mrb[44].mxu0 }
 0x8dc   :  { %v2887_v59 = vpop.f32.mrb[45].mxu0  ;;  %v2892_v10 = vpack.c.bf16 %v2885_v30, %v2885_v30  ;;  %v5058_v30 = vld [vmem:[%s6880_s5 + $0x178] sm:$0xff]  }
 0x8dd   :  { %v2889_v6 = vpop.f32.mrb[46].mxu0  ;;  %v2893_v39 = vpack.c.bf16 %v2887_v59, %v2887_v59  ;;  %v5059_v59 = vld [vmem:[%s6880_s5 + $0x180] sm:$0xff]  }
 0x8de   :  { %v2890_v11 = vpop.f32.mrb[47].mxu0  ;;  %v5060_v6 = vld [vmem:[%s6880_s5 + $0x188] sm:$0xff]  }
 0x8df   :  { %v5061_v11 = vld [vmem:[%s6883_s8] sm:$0xff]  }
 0x8e3   :  { %v2953_v40 = vpop.f32.mrb[48].mxu0 }
 0x8e4   :  { %v2955_v3 = vpop.f32.mrb[49].mxu0  ;;  %v2960_v9 = vpack.c.bf16 %v2953_v40, %v2953_v40  ;;  %v5115_v40 = vmov 0.0  }
 0x8e5   :  { %v2961_v5 = vpack.c.bf16 %v2955_v3, %v2955_v3  ;;  %v2957_v38 = vpop.f32.mrb[50].mxu0  ;;  %v5062_v3 = vld [vmem:[%s6883_s8 + $0x8] sm:$0xff]  }
 0x8e6   :  { %v2958_v23 = vpop.f32.mrb[51].mxu0  ;;  %v5065_v38 = vld [vmem:[%s6883_s8 + $0x20] sm:$0xff]  }
 0x8e7   :  { %4342 = vmatprep.mubr.msk.bf16.mxu0 %vm96_vm0, %v2961_v5  ;;  %v5064_v5 = vld [vmem:[%s6883_s8 + $0x18] sm:$0xff]  }
 0x8e8   :  { %3079 = vmatmul.mubr.bf16.vlgmr.msra.gmra.mrb[52].mxu0 %v2960_v9 }
 0x8e9   :  { %3150 = vmatpush1.bf16.msra.mxu0 %v5031_v58  ;;  %4353 = vmatprep.mubr.msk.bf16.mxu0 %vm96_vm0, %v2893_v39  ;;  %v5066_v58 = vld [vmem:[%s6883_s8 + $0x28] sm:$0xff]  }
 0x8ea   :  { %3151 = vmatprep.subr.bf16.mxu0 %v5113_v2 }
 0x8ed   :  { %3152 = vmatpush1.bf16.msra.mxu0 %v5032_v31 }
 0x8ee   :  { %3153 = vmatprep.subr.bf16.mxu0 %v5113_v2 }
 0x8f1   :  { %3154 = vmatpush1.bf16.msra.mxu0 %v5033_v42 }
 0x8f2   :  { %3155 = vmatprep.subr.bf16.mxu0 %v5113_v2 }
 0x8f5   :  { %3156 = vmatpush1.bf16.msra.mxu0 %v5034_v35 }
 0x8f6   :  { %3157 = vmatprep.subr.bf16.mxu0 %v5113_v2 }
 0x8f9   :  { %3158 = vmatpush1.bf16.msra.mxu0 %v5035_v41 }
 0x8fa   :  { %3159 = vmatprep.subr.bf16.mxu0 %v5113_v2 }
 0x8fd   :  { %3160 = vmatpush1.bf16.msra.mxu0 %v5036_v55 }
 0x8fe   :  { %3161 = vmatprep.subr.bf16.mxu0 %v5113_v2 }
 0x901   :  { %3162 = vmatpush1.bf16.msra.mxu0 %v5037_v44 }
 0x902   :  { %3163 = vmatprep.subr.bf16.mxu0 %v5113_v2 }
 0x905   :  { %3164 = vmatpush1.bf16.msra.mxu0 %v5038_v45 }
 0x906   :  { %3165 = vmatprep.subr.bf16.mxu0 %v5113_v2 }
 0x909   :  { %3166 = vmatpush1.bf16.msra.mxu0 %v5039_v51 }
 0x90a   :  { %3167 = vmatprep.subr.bf16.mxu0 %v5113_v2 }
 0x90d   :  { %3168 = vmatpush1.bf16.msra.mxu0 %v5040_v27 }
 0x90e   :  { %3194 = vmatprep.subr.bf16.mxu0 %v6560_v17 }
 0x910   :  { %3182 = vmatmul.mubr.bf16.vlgmr.msra.gmra.mrb[56].mxu0 %v2892_v10 }
 0x911   :  { %3195 = vmatpush1.bf16.msra.mxu0 %v6562_v0  ;;  %3226 = vmatprep.mubr.bf16.mxu0 %v5113_v2 }
 0x912   :  { %4355 = vmatprep.subr.msk.bf16.mxu0 %vm2844_vm5, %v6566_v25 }
 0x915   :  { %3197 = vmatpush1.bf16.msra.mxu0 %v6572_v48 }
 0x916   :  { %3367 = vmatprep.subr.bf16.mxu0 %v6560_v17 }
 0x918   :  { %4356 = vmatmul.mubr.msk.bf16.vlgmr.msra.gmra.mrb[60].mxu0 %vm2840_vm6, %v4354_v50 }
 0x919   :  { %3368 = vmatpush1.bf16.msra.mxu0 %v6562_v0  ;;  %3399 = vmatprep.mubr.bf16.mxu0 %v5113_v2 }
 0x91a   :  { %4389 = vmatprep.subr.msk.bf16.mxu0 %vm2844_vm5, %v6566_v25 }
 0x91d   :  { %3370 = vmatpush1.bf16.msra.mxu0 %v6572_v48 }
 0x91e   :  { %3494 = vmatprep.subr.bf16.mxu0 %v5113_v2 }
 0x920   :  { %4390 = vmatmul.mubr.msk.bf16.vlgmr.msra.gmra.mrb[64].mxu0 %vm2840_vm6, %v4388_v22 }
 0x921   :  { %3495 = vmatpush1.bf16.msra.mxu0 %v5041_v53 }
 0x922   :  { %3496 = vmatprep.subr.bf16.mxu0 %v5113_v2 }
 0x925   :  { %3497 = vmatpush1.bf16.msra.mxu0 %v5042_v49  ;;  %v5067_v49 = vld [vmem:[%s6883_s8 + $0x30] sm:$0xff]  }
 0x926   :  { %3498 = vmatprep.subr.bf16.mxu0 %v5113_v2 }
 0x929   :  { %3499 = vmatpush1.bf16.msra.mxu0 %v5043_v29  ;;  %v5068_v29 = vld [vmem:[%s6883_s8 + $0x38] sm:$0xff]  }
 0x92a   :  { %3500 = vmatprep.subr.bf16.mxu0 %v5113_v2 }
 0x92d   :  { %3501 = vmatpush1.bf16.msra.mxu0 %v5044_v61  ;;  %v5069_v61 = vld [vmem:[%s6883_s8 + $0x40] sm:$0xff]  }
 0x92e   :  { %3502 = vmatprep.subr.bf16.mxu0 %v5113_v2 }
 0x931   :  { %3503 = vmatpush1.bf16.msra.mxu0 %v5045_v34  ;;  %v5070_v34 = vld [vmem:[%s6883_s8 + $0x48] sm:$0xff]  }
 0x932   :  { %3504 = vmatprep.subr.bf16.mxu0 %v5113_v2 }
 0x935   :  { %3505 = vmatpush1.bf16.msra.mxu0 %v5046_v33  ;;  %v5071_v33 = vld [vmem:[%s6883_s8 + $0x50] sm:$0xff]  }
 0x936   :  { %3506 = vmatprep.subr.bf16.mxu0 %v5113_v2 }
 0x939   :  { %3507 = vmatpush1.bf16.msra.mxu0 %v5047_v57  ;;  %v5072_v57 = vld [vmem:[%s6883_s8 + $0x58] sm:$0xff]  }
 0x93a   :  { %3508 = vmatprep.subr.bf16.mxu0 %v5113_v2 }
 0x93d   :  { %3509 = vmatpush1.bf16.msra.mxu0 %v5048_v63  ;;  %v5073_v63 = vld [vmem:[%s6883_s8 + $0x60] sm:$0xff]  }
 0x93e   :  { %3510 = vmatprep.subr.bf16.mxu0 %v5113_v2 }
 0x941   :  { %3511 = vmatpush1.bf16.msra.mxu0 %v5049_v60  ;;  %v5074_v60 = vld [vmem:[%s6883_s8 + $0x68] sm:$0xff]  }
 0x942   :  { %3512 = vmatprep.subr.bf16.mxu0 %v5113_v2 }
 0x945   :  { %3513 = vmatpush1.bf16.msra.mxu0 %v5050_v12 }
 0x946   :  { %4490 = vmatprep.subr.bf16.mxu0 %v5115_v40 }
 0x9bb   :  { %v3080_v19 = vpop.f32.mrb[52].mxu0 }
 0x9bc   :  { %v3082_v28 = vpop.f32.mrb[53].mxu0 }
 0x9bd   :  { %v3083_v13 = vpop.f32.mrb[54].mxu0 }
 0x9be   :  { %v3084_v62 = vpop.f32.mrb[55].mxu0 }
 0x9e3   :  { %v3183_v8 = vpop.f32.mrb[56].mxu0 }
 0x9e4   :  { %v6731_v18 = vadd.f32 %v3183_v8, %v3080_v19  ;;  %v3185_v15 = vpop.f32.mrb[57].mxu0  ;;  %v3708_v19 = vld [vmem:[%s6882_s7 + $0x4] ss:$0 sm:$0xff] }
 0x9e5   :  { %v3186_v52 = vpop.f32.mrb[58].mxu0 }
 0x9e6   :  { %v3187_v20 = vpop.f32.mrb[59].mxu0 }
 0x9e7   :  { %v5075_v20 = vld [vmem:[%s6883_s8 + $0x70] sm:$0xff]  }
 0x9eb   :  { %v3228_v36 = vpop.f32.mrb[60].mxu0 }
 0x9ec   :  { %v3230_v1 = vpop.f32.mrb[61].mxu0  ;;  %v3235_v32 = vpack.c.bf16 %v3228_v36, %v3228_v36  ;;  %v5076_v36 = vld [vmem:[%s6883_s8 + $0x78] sm:$0xff]  }
 0x9ed   :  { %v3236_v37 = vpack.c.bf16 %v3230_v1, %v3230_v1  ;;  %v3232_v17 = vpop.f32.mrb[62].mxu0  ;;  %v3744_v1 = vld [vmem:[%s6882_s7 + $0x5] ss:$0 sm:$0xff] }
 0x9ee   :  { %v3233_v21 = vpop.f32.mrb[63].mxu0 }
 0x9ef   :  { %4387 = vmatprep.mubr.msk.bf16.mxu1 %vm96_vm0, %v3236_v37 }
 0x9f0   :  { %3354 = vmatmul.mubr.bf16.vlgmr.msra.gmra.mrb[28].mxu1 %v3235_v32 }
 0x9f1   :  { %3541 = vmatpush1.bf16.msra.mxu1 %v6562_v0  ;;  %3572 = vmatprep.mubr.bf16.mxu1 %v5113_v2 }
 0x9f2   :  { %4423 = vmatprep.subr.msk.bf16.mxu1 %vm2844_vm5, %v6566_v25  ;;  %v5052_v25 = vld [vmem:[%s6880_s5 + $0x148] sm:$0xff]  }
 0x9f3   :  { %v3401_v46 = vpop.f32.mrb[64].mxu0 }
 0x9f4   :  { %v3408_v4 = vpack.c.bf16 %v3401_v46, %v3401_v46  ;;  %v3403_v7 = vpop.f32.mrb[65].mxu0 }
 0x9f5   :  { %v3409_v43 = vpack.c.bf16 %v3403_v7, %v3403_v7  ;;  %3543 = vmatpush1.bf16.msra.mxu1 %v6572_v48  ;;  %v3405_v0 = vpop.f32.mrb[66].mxu0  ;;  %v5053_v48 = vld [vmem:[%s6880_s5 + $0x150] sm:$0xff]  }
 0x9f6   :  { %3667 = vmatprep.subr.bf16.mxu1 %v5113_v2  ;;  %v3406_v16 = vpop.f32.mrb[67].mxu0 }
 0x9f7   :  { %4421 = vmatprep.mubr.msk.bf16.mxu0 %vm96_vm0, %v3409_v43  ;;  %v3835_v43 = vld [vmem:[%s6882_s7 + $0x6] ss:$0 sm:$0xff] }
 0x9f8   :  { %3527 = vmatmul.mubr.bf16.vlgmr.msra.gmra.mrb[68].mxu0 %v3408_v4  ;;  %4424 = vmatmul.mubr.msk.bf16.vlgmr.msra.gmra.mrb[32].mxu1 %vm2840_vm6, %v4422_v54 }
 0x9f9   :  { %3668 = vmatpush1.bf16.msra.mxu1 %v5051_v56  ;;  %4491 = vmatpush3.bf16.msra.mxu0 %v5061_v11 }
 0x9fa   :  { %3669 = vmatprep.subr.bf16.mxu1 %v5113_v2  ;;  %4492 = vmatprep.subr.bf16.mxu0 %v5115_v40 }
 0x9fb   :  { %4506 = vmatprep.mubr.msk.bf16.mxu0 %vm5116_vm7, %v5115_v40 }
 0x9fd   :  { %3670 = vmatpush1.bf16.msra.mxu1 %v5052_v25  ;;  %4493 = vmatpush3.bf16.msra.mxu0 %v5062_v3 }
 0x9fe   :  { %3671 = vmatprep.subr.bf16.mxu1 %v5113_v2  ;;  %4494 = vmatprep.subr.bf16.mxu0 %v5115_v40 }
 0xa01   :  { %3672 = vmatpush1.bf16.msra.mxu1 %v5053_v48 }
 0xa02   :  { %3673 = vmatprep.subr.bf16.mxu1 %v5113_v2 }
 0xa05   :  { %3674 = vmatpush1.bf16.msra.mxu1 %v5054_v14 }
 0xa06   :  { %3675 = vmatprep.subr.bf16.mxu1 %v5113_v2 }
 0xa09   :  { %3676 = vmatpush1.bf16.msra.mxu1 %v5055_v47 }
 0xa0a   :  { %3677 = vmatprep.subr.bf16.mxu1 %v5113_v2 }
 0xa0d   :  { %3678 = vmatpush1.bf16.msra.mxu1 %v5056_v24 }
 0xa0e   :  { %3679 = vmatprep.subr.bf16.mxu1 %v5113_v2 }
 0xa11   :  { %3680 = vmatpush1.bf16.msra.mxu1 %v5057_v26 }
 0xa12   :  { %3681 = vmatprep.subr.bf16.mxu1 %v5113_v2 }
 0xa15   :  { %3682 = vmatpush1.bf16.msra.mxu1 %v5058_v30 }
 0xa16   :  { %3683 = vmatprep.subr.bf16.mxu1 %v5113_v2 }
 0xa19   :  { %3684 = vmatpush1.bf16.msra.mxu1 %v5059_v59 }
 0xa1a   :  { %3685 = vmatprep.subr.bf16.mxu1 %v5113_v2  ;;  %v5063_v2 = vld [vmem:[%s6883_s8 + $0x10] sm:$0xff]   ;;  %s5117_s8 = smov [#allocation4]  }
 0xa1b   :  { %4495 = vmatpush3.bf16.msra.mxu0 %v5063_v2  ;;  %s3942_s7 = sshll.u32 %s5117_s8, 4  ;;  %s3943_s7 = int_to_ptr.vmem [resolvable:$true] %s3942_s7 }
 0xa1c   :  { %4496 = vmatprep.subr.bf16.mxu0 %v5115_v40  ;;  %s5089_s11 = scalar_lea.vmem %s3943_s7, 32  ;;  %p5094_p1 = scmp.lt.s32.totalorder %s3943_s7, %s3943_s7 }
 0xa1d   :  { %3686 = vmatpush1.bf16.msra.mxu1 %v5060_v6  ;;  %p5090_p0 = scmp.ne.s32.totalorder %s3943_s7, %s5089_s11  ;;  %p5095_p2 = scmp.lt.s32.totalorder %s5089_s11, %s5089_s11 }
 0xa1e   :  { %4510 = vmatprep.subr.bf16.mxu1 %v5115_v40 }
 0xa1f   :  { %4497 = vmatpush3.bf16.msra.mxu0 %v5064_v5  ;;  %p5096_p3 = por %p5095_p2, %p5094_p1 }
 0xa20   :  { %4498 = vmatprep.subr.bf16.mxu0 %v5115_v40 }
 0xa21   :  { %p5097_p4 = pnand %p5096_p3, %p5090_p0 }
 0xa23   :  { %4499 = vmatpush3.bf16.msra.mxu0 %v5065_v38 }
 0xa24   :  { %4500 = vmatprep.subr.bf16.mxu0 %v5115_v40 }
 0xa27   :  { %4501 = vmatpush3.bf16.msra.mxu0 %v5066_v58 }
 0xa28   :  { %4502 = vmatprep.subr.bf16.mxu0 %v5115_v40 }
 0xa2b   :  { %4503 = vmatpush3.bf16.msra.mxu0 %v5067_v49 }
 0xa2c   :  { %4504 = vmatprep.subr.bf16.mxu0 %v5115_v40 }
 0xa2f   :  { %4505 = vmatpush3.bf16.msra.mxu0 %v5068_v29 }
 0xac3   :  { %v3355_v9 = vpop.f32.mrb[28].mxu1 }
 0xac4   :  { %v3361_v23 = vadd.f32 %v3355_v9, %v6731_v18  ;;  %v3357_v39 = vpop.f32.mrb[29].mxu1 }
 0xac5   :  { %v3358_v31 = vpop.f32.mrb[30].mxu1 }
 0xac6   :  { %v3359_v42 = vpop.f32.mrb[31].mxu1 }
 0xacb   :  { %v3528_v35 = vpop.f32.mrb[68].mxu0  ;;  %v3574_v41 = vpop.f32.mrb[32].mxu1 }
 0xacc   :  { %v3534_v55 = vadd.f32 %v3528_v35, %v3361_v23  ;;  %v3576_v44 = vpop.f32.mrb[33].mxu1  ;;  %v3530_v45 = vpop.f32.mrb[69].mxu0  ;;  %v3581_v50 = vpack.c.bf16 %v3574_v41, %v3574_v41 }
 0xacd   :  { %v3582_v51 = vpack.c.bf16 %v3576_v44, %v3576_v44  ;;  %v3578_v27 = vpop.f32.mrb[34].mxu1  ;;  %v3531_v10 = vpop.f32.mrb[70].mxu0 }
 0xace   :  { %v3579_v22 = vpop.f32.mrb[35].mxu1  ;;  %v3532_v53 = vpop.f32.mrb[71].mxu0 }
 0xacf   :  { %4455 = vmatprep.mubr.msk.bf16.mxu1 %vm96_vm0, %v3582_v51 }
 0xad0   :  { %3700 = vmatmul.mubr.bf16.vlgmr.msra.gmra.mrb[36].mxu1 %v3581_v50 }
 0xad1   :  { %4526 = vmatprep.mubr.msk.bf16.mxu1 %vm5116_vm7, %v5115_v40  ;;  %4511 = vmatpush3.bf16.msra.mxu1 %v5069_v61 }
 0xad2   :  { %4512 = vmatprep.subr.bf16.mxu1 %v5115_v40 }
 0xad5   :  { %4513 = vmatpush3.bf16.msra.mxu1 %v5070_v34 }
 0xad6   :  { %4514 = vmatprep.subr.bf16.mxu1 %v5115_v40 }
 0xad9   :  { %4515 = vmatpush3.bf16.msra.mxu1 %v5071_v33 }
 0xada   :  { %4516 = vmatprep.subr.bf16.mxu1 %v5115_v40 }
 0xadd   :  { %4517 = vmatpush3.bf16.msra.mxu1 %v5072_v57 }
 0xade   :  { %4518 = vmatprep.subr.bf16.mxu1 %v5115_v40 }
 0xae1   :  { %4519 = vmatpush3.bf16.msra.mxu1 %v5073_v63 }
 0xae2   :  { %4520 = vmatprep.subr.bf16.mxu1 %v5115_v40 }
 0xae5   :  { %4521 = vmatpush3.bf16.msra.mxu1 %v5074_v60 }
 0xae6   :  { %4522 = vmatprep.subr.bf16.mxu1 %v5115_v40 }
 0xae9   :  { %4523 = vmatpush3.bf16.msra.mxu1 %v5075_v20 }
 0xaea   :  { %4524 = vmatprep.subr.bf16.mxu1 %v5115_v40 }
 0xaed   :  { %4525 = vmatpush3.bf16.msra.mxu1 %v5076_v36 }
 0xba3   :  { %v3701_v12 = vpop.f32.mrb[36].mxu1 }
 0xba4   :  { %v3707_v28 = vadd.f32 %v3701_v12, %v3534_v55  ;;  %v3703_v13 = vpop.f32.mrb[37].mxu1 }
 0xba5   :  { %v3704_v62 = vpop.f32.mrb[38].mxu1 }
 0xba6   :  { %v3709_v8 = vadd.f32 %v3708_v19, %v3707_v28  ;;  %v3705_v18 = vpop.f32.mrb[39].mxu1 }
 0xba8   :  { %v3710_v15 = vmax.f32 %v3709_v8, 0.0 }
 0xbaa   :  { %v3711_v52 = vpack.c.bf16 %v3710_v15, %v3710_v15 }
 0xbac   :  { %4507 = vmatmul.mubr.bf16.vlgmr.msra.gmra.mrb[72].mxu0 %v3711_v52 }
 0xc7f   :  { %v3827_v37 = vpop.f32.mrb[72].mxu0 }
 0xc80   :  { %v3828_v17 = vadd.f32 %v3827_v37, %v3744_v1  ;;  %v4508_v32 = vpop.f32.mrb[73].mxu0 }
 0xc81   :  { %v3830_v21 = vpop.f32.mrb[74].mxu0 }
 0xc82   :  { %v3833_v46 = vmax.f32 %v3828_v17, 0.0  ;;  %v4509_v4 = vpop.f32.mrb[75].mxu0 }
 0xc84   :  { %v3834_v7 = vpack.c.bf16 %v3833_v46, %v3833_v46 }
 0xc86   :  { %4527 = vmatmul.mubr.bf16.vlgmr.msra.gmra.mrb[40].mxu1 %v3834_v7 }
 0xd59   :  { %v3918_v54 = vpop.f32.mrb[40].mxu1 }
 0xd5a   :  { %v3919_v56 = vadd.f32 %v3918_v54, %v3835_v43  ;;  %v4528_v0 = vpop.f32.mrb[41].mxu1 }
 0xd5b   :  { %v3921_v16 = vpop.f32.mrb[42].mxu1 }
 0xd5c   :  { %v4529_v25 = vpop.f32.mrb[43].mxu1  ;;  %v3924_v48 = vsel %vm2844_vm5, %v3919_v56, -inf }
 0xd5d   :  { %3925 = vmax.xlane.f32.xlu0 %v3924_v48 }
 0xdea   :  { %v3926_v14 = vpop.xlane.xlu0 %3925 }
 0xdeb   :  { %v3927_v47 = vsub.f32 %v3919_v56, %v3926_v14 }
 0xded   :  { %v3928_v24 = vmul.f32 1.442695, %v3927_v47 }
 0xdef   :  { %5085 = vpow2.f32 %v3928_v24 }
 0xdf9   :  { %v5086_v26 = vpop.eup %5085 }
 0xdfa   :  { %v3930_v30 = vsel %vm2844_vm5, %v5086_v26, 0.0 }
 0xdfb   :  { %3931 = vadd.xlane.f32.xlu0 %v3930_v30 }
 0xe88   :  { %v3932_v59 = vpop.xlane.xlu0 %3931 }
 0xe89   :  { %5087 = vrcp.f32 %v3932_v59 }
 0xe93   :  { %v5088_v6 = vpop.eup %5087 }
 0xe94   :  { %v3934_v11 = vmul.f32 %v5088_v6, %v5086_v26 }
 0xe96   :  { %3935 = vst [vmem:[#allocation4] sm:$0x3] %v3934_v11 }
 0xe97   :  { %5100 = shalt.err (!%p5097_p4)
}
 0xe98   :  { %s5101_s13 = scalar_lea.hbm %s6884_s9, 32 }
 0xe99   :  { %p5102_p5 = scmp.ne.s32.totalorder %s6884_s9, %s5101_s13  ;;  %p5105_p6 = scmp.lt.u32.totalorder %s5101_s13, %s6884_s9 }
 0xe9b   :  { %p5107_p7 = pnand %p5105_p6, %p5102_p5 }
 0xe9d   :  { %5110 = shalt.err (!%p5107_p7)
}
 0xe9e   :  { %3945 = dma.vmem_to_hbm [thread:$0]  %s3943_s7, 32, %s6884_s9, [#allocation5]  }
 0xe9f   :  { %5111 = dma.done.wait [#allocation5], 32  }
 0xea0   :  { %5112 = vsyncadd [#allocation5], 4294967264 }
 0xea1   :  { %3949 = vsyncpa [#allocation5], 1 }

</bundles_post_ra>
